<compile_context>
chip_gen: v6e
topology: v6e:2x2x1
jax: 0.10.0
libtpu: 0.0.40
codegen_flags: <defaults>
</compile_context>

<pallas_src>
import functools

import jax
import jax.numpy as jnp
from jax.experimental import pallas as pl
from jax.experimental.pallas import tpu as pltpu

EPS = 1e-5
PAD = 128   # lane-aligned zero pad on each side of the flattened spatial axis


def _fused_two_conv_kernel(W,
                           x_ref, w1_ref, b1_ref, g1_ref, be1_ref,
                           w2_ref, b2_ref, g2_ref, be2_ref,
                           out_ref,
                           pad1_ref, p1_ref, pad2_ref, p2_ref):
    """Fused (conv3x3 -> BN(train) -> ReLU) * 2.

    x_ref   : (B, Cin,  H*W)        NCHW input, spatial flattened onto lanes
    w1_ref  : (Cout, 9*Cin)         conv1 weight, K index = (dy*3+dx)*Cin + c
    w2_ref  : (Cout, 9*Cout)        conv2 weight, same K ordering
    b/g/be  : (Cout, 1)             conv bias / BN weight / BN bias
    out_ref : (B, Cout, H*W)
    padX_ref: (B, C, PAD+H*W+PAD)   zero-padded flat image scratch (VMEM)
    pX_ref  : (B, 9*C, H*W)         im2col patch scratch (VMEM)
    """
    B, Cin, HW = x_ref.shape
    Cout = out_ref.shape[1]
    n_total = B * HW

    # Column-validity masks along the flattened spatial (lane) axis.  Row (dy)
    # boundaries are handled by the zero padding of the flat scratch; only the
    # dx = 0 / dx = 2 taps can wrap into a neighbouring row and need masking.
    xx = jax.lax.broadcasted_iota(jnp.int32, (1, 1, HW), 2) % W
    m_left = (xx > 0).astype(jnp.float32)          # zero where output col == 0
    m_right = (xx < (W - 1)).astype(jnp.float32)   # zero where output col == W-1

    def im2col(src_ref, dst_ref, cin):
        # dst[:, k*cin:(k+1)*cin, :] = tap (dy,dx): image shifted by
        # (dy-1, dx-1) with zero boundary handling.
        for k in range(9):
            dy, dx = k // 3, k % 3
            d = (dy - 1) * W + (dx - 1)
            tap = src_ref[:, :, PAD + d: PAD + d + HW]     # (B, cin, HW)
            if dx == 0:
                tap = tap * m_left
            elif dx == 2:
                tap = tap * m_right
            dst_ref[:, k * cin:(k + 1) * cin, :] = tap

    def conv_bn_relu(p_ref, w_ref, b_ref, g_ref, be_ref):
        w = w_ref[...]                                     # (Cout, K)
        bias = b_ref[...]                                  # (Cout, 1)
        accs = []
        s1 = jnp.zeros((Cout, 1), jnp.float32)
        s2 = jnp.zeros((Cout, 1), jnp.float32)
        for bi in range(B):
            # single im2col matmul per image: (Cout, K) @ (K, HW)
            a = jnp.dot(w, p_ref[bi], preferred_element_type=jnp.float32) + bias
            accs.append(a)                                 # (Cout, HW) lane-dense
            s1 = s1 + jnp.sum(a, axis=1, keepdims=True)    # one-pass BN stats
            s2 = s2 + jnp.sum(a * a, axis=1, keepdims=True)
        mean = s1 / n_total                                # training-mode batch stats
        var = s2 / n_total - mean * mean                   # biased variance
        scale = g_ref[...] * jax.lax.rsqrt(var + EPS)      # (Cout, 1)
        shift = be_ref[...] - mean * scale
        return [jnp.maximum(a * scale + shift, 0.0) for a in accs]

    # ------------------------------ stage 1 ------------------------------
    pad1_ref[...] = jnp.zeros_like(pad1_ref)
    pad1_ref[:, :, PAD:PAD + HW] = x_ref[...]              # lane-aligned interior
    im2col(pad1_ref, p1_ref, Cin)
    y1 = conv_bn_relu(p1_ref, w1_ref, b1_ref, g1_ref, be1_ref)

    # ---------------- stage 2 (activation never leaves VMEM) -------------
    pad2_ref[...] = jnp.zeros_like(pad2_ref)
    for bi in range(B):
        pad2_ref[bi, :, PAD:PAD + HW] = y1[bi]
    im2col(pad2_ref, p2_ref, Cout)
    y2 = conv_bn_relu(p2_ref, w2_ref, b2_ref, g2_ref, be2_ref)

    for bi in range(B):
        out_ref[bi] = y2[bi]                               # lane-dense store


def _w_to_mat(w_oihw):
    # (Cout, Cin, 3, 3) -> (Cout, 9*Cin) with column index (dy*3+dx)*Cin + c.
    co, ci = w_oihw.shape[0], w_oihw.shape[1]
    return jnp.transpose(w_oihw, (0, 2, 3, 1)).reshape(co, 9 * ci)


def two_conv3x3_forward(x_nchw, params):
    """PyTorch-equivalent forward: NCHW in, NCHW out. One fused Pallas call."""
    B, Cin, H, W = x_nchw.shape
    Cout = params["w1"].shape[0]
    HW = H * W
    assert W + 1 <= PAD, "flat zero-pad must cover one full row shift"
    padded = PAD + HW + PAD

    x_flat = x_nchw.reshape(B, Cin, HW)                    # free reshape (NCHW kept)
    w1m = _w_to_mat(params["w1"])
    w2m = _w_to_mat(params["w2"])
    col = lambda v: v.reshape(-1, 1)

    vmem = pl.BlockSpec(memory_space=pltpu.MemorySpace.VMEM)
    out_flat = pl.pallas_call(
        functools.partial(_fused_two_conv_kernel, W),
        out_shape=jax.ShapeDtypeStruct((B, Cout, HW), jnp.float32),
        in_specs=[vmem] * 9,
        out_specs=vmem,
        scratch_shapes=[
            pltpu.VMEM((B, Cin, padded), jnp.float32),     # stage-1 padded image
            pltpu.VMEM((B, 9 * Cin, HW), jnp.float32),     # stage-1 im2col
            pltpu.VMEM((B, Cout, padded), jnp.float32),    # stage-2 padded image
            pltpu.VMEM((B, 9 * Cout, HW), jnp.float32),    # stage-2 im2col
        ],
    )(x_flat, w1m, col(params["b1"]), col(params["g1"]), col(params["be1"]),
      w2m, col(params["b2"]), col(params["g2"]), col(params["be2"]))
    return out_flat.reshape(B, Cout, H, W)                 # free reshape


def init_params(key, in_ch, out_ch):
    """Deterministic synthetic parameters (PyTorch weight layout (Cout,Cin,3,3))."""
    k1, k2, k3, k4, k5, k6, k7, k8 = jax.random.split(key, 8)
    s1 = (2.0 / (in_ch * 9)) ** 0.5
    s2 = (2.0 / (out_ch * 9)) ** 0.5
    w1 = jax.random.normal(k1, (out_ch, in_ch, 3, 3), jnp.float32) * s1
    b1 = jax.random.normal(k2, (out_ch,), jnp.float32) * 0.1
    g1 = 1.0 + 0.1 * jax.random.normal(k3, (out_ch,), jnp.float32)
    be1 = 0.1 * jax.random.normal(k4, (out_ch,), jnp.float32)
    w2 = jax.random.normal(k5, (out_ch, out_ch, 3, 3), jnp.float32) * s2
    b2 = jax.random.normal(k6, (out_ch,), jnp.float32) * 0.1
    g2 = 1.0 + 0.1 * jax.random.normal(k7, (out_ch,), jnp.float32)
    be2 = 0.1 * jax.random.normal(k8, (out_ch,), jnp.float32)
    return dict(w1=w1, b1=b1, g1=g1, be1=be1, w2=w2, b2=b2, g2=g2, be2=be2)


# ---------------------------- pure-JAX reference ----------------------------
def _ref_block(x_nchw, w, b, gamma, beta):
    y = jax.lax.conv_general_dilated(
        x_nchw, w, window_strides=(1, 1), padding=((1, 1), (1, 1)),
        dimension_numbers=("NCHW", "OIHW", "NCHW"))
    y = y + b[None, :, None, None]
    mean = jnp.mean(y, axis=(0, 2, 3), keepdims=True)
    var = jnp.mean((y - mean) ** 2, axis=(0, 2, 3), keepdims=True)
    y = (y - mean) * jax.lax.rsqrt(var + EPS)
    y = y * gamma[None, :, None, None] + beta[None, :, None, None]
    return jnp.maximum(y, 0.0)


def two_conv3x3_ref(x_nchw, p):
    y = _ref_block(x_nchw, p["w1"], p["b1"], p["g1"], p["be1"])
    return _ref_block(y, p["w2"], p["b2"], p["g2"], p["be2"])


if __name__ == "__main__":
    B, Cin, Cout, H, W = 2, 4, 8, 16, 16
    key = jax.random.PRNGKey(0)
    kx, kp = jax.random.split(key)
    x = jax.random.normal(kx, (B, Cin, H, W), jnp.float32)
    params = init_params(kp, Cin, Cout)

    out = jax.block_until_ready(two_conv3x3_forward(x, params))
    ref = jax.block_until_ready(two_conv3x3_ref(x, params))

    assert out.shape == (B, Cout, H, W), out.shape
    assert jnp.allclose(out, ref, atol=2e-4, rtol=2e-4), \
        float(jnp.max(jnp.abs(out - ref)))

    print("KERNEL_OK")
</pallas_src>

<mosaic_0001>
module attributes {stable_mosaic.version = 11 : i64} {
  func.func @_fused_two_conv_kernel(%arg0: memref<2x4x256xf32, #tpu.memory_space<vmem>>, %arg1: memref<8x36xf32, #tpu.memory_space<vmem>>, %arg2: memref<8x1xf32, #tpu.memory_space<vmem>>, %arg3: memref<8x1xf32, #tpu.memory_space<vmem>>, %arg4: memref<8x1xf32, #tpu.memory_space<vmem>>, %arg5: memref<8x72xf32, #tpu.memory_space<vmem>>, %arg6: memref<8x1xf32, #tpu.memory_space<vmem>>, %arg7: memref<8x1xf32, #tpu.memory_space<vmem>>, %arg8: memref<8x1xf32, #tpu.memory_space<vmem>>, %arg9: memref<2x8x256xf32, #tpu.memory_space<vmem>>, %arg10: memref<2x4x512xf32, #tpu.memory_space<vmem>>, %arg11: memref<2x36x256xf32, #tpu.memory_space<vmem>>, %arg12: memref<2x8x512xf32, #tpu.memory_space<vmem>>, %arg13: memref<2x72x256xf32, #tpu.memory_space<vmem>>) attributes {dimension_semantics = [], scalar_prefetch = 0 : i64, scratch_operands = 4 : i64, tpu.core_type = #tpu.core_type<tc>} {
    %0 = tpu.iota {dimensions = array<i32: 2>} : vector<1x1x256xi32>
    %c16_i32 = arith.constant 16 : i32
    %c0_i32 = arith.constant 0 : i32
    %1 = arith.cmpi eq, %c16_i32, %c0_i32 : i32
    %c1_i32 = arith.constant 1 : i32
    %2 = arith.select %1, %c1_i32, %c16_i32 : i32
    %3 = vector.broadcast %2 : i32 to vector<1x1x256xi32>
    %4 = arith.remsi %0, %3 : vector<1x1x256xi32>
    %c0_i32_0 = arith.constant 0 : i32
    %5 = vector.broadcast %c0_i32_0 : i32 to vector<1x1x256xi32>
    %6 = arith.cmpi ne, %4, %5 : vector<1x1x256xi32>
    %c0_i32_1 = arith.constant 0 : i32
    %7 = vector.broadcast %c0_i32_1 : i32 to vector<1x1x256xi32>
    %8 = arith.cmpi slt, %4, %7 : vector<1x1x256xi32>
    %c0_i32_2 = arith.constant 0 : i32
    %9 = arith.cmpi slt, %2, %c0_i32_2 : i32
    %10 = vector.broadcast %9 : i1 to vector<1x1x256xi1>
    %11 = vector.broadcast %10 : vector<1x1x256xi1> to vector<1x1x256xi1>
    %12 = arith.xori %8, %11 : vector<1x1x256xi1>
    %13 = arith.andi %12, %6 : vector<1x1x256xi1>
    %14 = vector.broadcast %2 : i32 to vector<1x1x256xi32>
    %15 = arith.addi %4, %14 : vector<1x1x256xi32>
    %16 = arith.select %13, %15, %4 : vector<1x1x256xi1>, vector<1x1x256xi32>
    %c0_i32_3 = arith.constant 0 : i32
    %17 = vector.broadcast %c0_i32_3 : i32 to vector<1x1x256xi32>
    %18 = arith.cmpi sgt, %16, %17 : vector<1x1x256xi32>
    %19 = arith.extui %18 : vector<1x1x256xi1> to vector<1x1x256xi32>
    %20 = arith.sitofp %19 : vector<1x1x256xi32> to vector<1x1x256xf32>
    %c15_i32 = arith.constant 15 : i32
    %21 = vector.broadcast %c15_i32 : i32 to vector<1x1x256xi32>
    %22 = arith.cmpi slt, %16, %21 : vector<1x1x256xi32>
    %23 = arith.extui %22 : vector<1x1x256xi1> to vector<1x1x256xi32>
    %24 = arith.sitofp %23 : vector<1x1x256xi32> to vector<1x1x256xf32>
    %cst = arith.constant 0.000000e+00 : f32
    %25 = vector.broadcast %cst : f32 to vector<2x4x512xf32>
    %c0 = arith.constant 0 : index
    %c0_4 = arith.constant 0 : index
    %c0_5 = arith.constant 0 : index
    %26 = vector.load %arg10[%c0, %c0_4, %c0_5] : memref<2x4x512xf32, #tpu.memory_space<vmem>>, vector<2x4x512xf32>
    tpu.vector_store %arg10[%c0, %c0_4, %c0_5], %25 {strides = array<i32>} : memref<2x4x512xf32, #tpu.memory_space<vmem>>, vector<2x4x512xf32>,
    %c0_6 = arith.constant 0 : index
    %c0_7 = arith.constant 0 : index
    %c0_8 = arith.constant 0 : index
    %27 = vector.load %arg0[%c0_6, %c0_7, %c0_8] : memref<2x4x256xf32, #tpu.memory_space<vmem>>, vector<2x4x256xf32>
    %c0_9 = arith.constant 0 : index
    %c0_10 = arith.constant 0 : index
    %c128 = arith.constant 128 : index
    %28 = vector.load %arg10[%c0_9, %c0_10, %c128] : memref<2x4x512xf32, #tpu.memory_space<vmem>>, vector<2x4x256xf32>
    tpu.vector_store %arg10[%c0_9, %c0_10, %c128], %27 {strides = array<i32>} : memref<2x4x512xf32, #tpu.memory_space<vmem>>, vector<2x4x256xf32>,
    %c0_11 = arith.constant 0 : index
    %c0_12 = arith.constant 0 : index
    %c111 = arith.constant 111 : index
    %29 = vector.load %arg10[%c0_11, %c0_12, %c111] : memref<2x4x512xf32, #tpu.memory_space<vmem>>, vector<2x4x256xf32>
    %30 = vector.broadcast %20 : vector<1x1x256xf32> to vector<2x4x256xf32>
    %31 = arith.mulf %29, %30 : vector<2x4x256xf32>
    %c0_13 = arith.constant 0 : index
    %c0_14 = arith.constant 0 : index
    %c0_15 = arith.constant 0 : index
    %32 = vector.load %arg11[%c0_13, %c0_14, %c0_15] : memref<2x36x256xf32, #tpu.memory_space<vmem>>, vector<2x4x256xf32>
    tpu.vector_store %arg11[%c0_13, %c0_14, %c0_15], %31 {strides = array<i32>} : memref<2x36x256xf32, #tpu.memory_space<vmem>>, vector<2x4x256xf32>,
    %c0_16 = arith.constant 0 : index
    %c0_17 = arith.constant 0 : index
    %c112 = arith.constant 112 : index
    %33 = vector.load %arg10[%c0_16, %c0_17, %c112] : memref<2x4x512xf32, #tpu.memory_space<vmem>>, vector<2x4x256xf32>
    %c0_18 = arith.constant 0 : index
    %c4 = arith.constant 4 : index
    %c0_19 = arith.constant 0 : index
    %34 = vector.load %arg11[%c0_18, %c4, %c0_19] : memref<2x36x256xf32, #tpu.memory_space<vmem>>, vector<2x4x256xf32>
    tpu.vector_store %arg11[%c0_18, %c4, %c0_19], %33 {strides = array<i32>} : memref<2x36x256xf32, #tpu.memory_space<vmem>>, vector<2x4x256xf32>,
    %c0_20 = arith.constant 0 : index
    %c0_21 = arith.constant 0 : index
    %c113 = arith.constant 113 : index
    %35 = vector.load %arg10[%c0_20, %c0_21, %c113] : memref<2x4x512xf32, #tpu.memory_space<vmem>>, vector<2x4x256xf32>
    %36 = vector.broadcast %24 : vector<1x1x256xf32> to vector<2x4x256xf32>
    %37 = arith.mulf %35, %36 : vector<2x4x256xf32>
    %c0_22 = arith.constant 0 : index
    %c8 = arith.constant 8 : index
    %c0_23 = arith.constant 0 : index
    %38 = vector.load %arg11[%c0_22, %c8, %c0_23] : memref<2x36x256xf32, #tpu.memory_space<vmem>>, vector<2x4x256xf32>
    tpu.vector_store %arg11[%c0_22, %c8, %c0_23], %37 {strides = array<i32>} : memref<2x36x256xf32, #tpu.memory_space<vmem>>, vector<2x4x256xf32>,
    %c0_24 = arith.constant 0 : index
    %c0_25 = arith.constant 0 : index
    %c127 = arith.constant 127 : index
    %39 = vector.load %arg10[%c0_24, %c0_25, %c127] : memref<2x4x512xf32, #tpu.memory_space<vmem>>, vector<2x4x256xf32>
    %40 = vector.broadcast %20 : vector<1x1x256xf32> to vector<2x4x256xf32>
    %41 = arith.mulf %39, %40 : vector<2x4x256xf32>
    %c0_26 = arith.constant 0 : index
    %c12 = arith.constant 12 : index
    %c0_27 = arith.constant 0 : index
    %42 = vector.load %arg11[%c0_26, %c12, %c0_27] : memref<2x36x256xf32, #tpu.memory_space<vmem>>, vector<2x4x256xf32>
    tpu.vector_store %arg11[%c0_26, %c12, %c0_27], %41 {strides = array<i32>} : memref<2x36x256xf32, #tpu.memory_space<vmem>>, vector<2x4x256xf32>,
    %c0_28 = arith.constant 0 : index
    %c0_29 = arith.constant 0 : index
    %c128_30 = arith.constant 128 : index
    %43 = vector.load %arg10[%c0_28, %c0_29, %c128_30] : memref<2x4x512xf32, #tpu.memory_space<vmem>>, vector<2x4x256xf32>
    %c0_31 = arith.constant 0 : index
    %c16 = arith.constant 16 : index
    %c0_32 = arith.constant 0 : index
    %44 = vector.load %arg11[%c0_31, %c16, %c0_32] : memref<2x36x256xf32, #tpu.memory_space<vmem>>, vector<2x4x256xf32>
    tpu.vector_store %arg11[%c0_31, %c16, %c0_32], %43 {strides = array<i32>} : memref<2x36x256xf32, #tpu.memory_space<vmem>>, vector<2x4x256xf32>,
    %c0_33 = arith.constant 0 : index
    %c0_34 = arith.constant 0 : index
    %c129 = arith.constant 129 : index
    %45 = vector.load %arg10[%c0_33, %c0_34, %c129] : memref<2x4x512xf32, #tpu.memory_space<vmem>>, vector<2x4x256xf32>
    %46 = vector.broadcast %24 : vector<1x1x256xf32> to vector<2x4x256xf32>
    %47 = arith.mulf %45, %46 : vector<2x4x256xf32>
    %c0_35 = arith.constant 0 : index
    %c20 = arith.constant 20 : index
    %c0_36 = arith.constant 0 : index
    %48 = vector.load %arg11[%c0_35, %c20, %c0_36] : memref<2x36x256xf32, #tpu.memory_space<vmem>>, vector<2x4x256xf32>
    tpu.vector_store %arg11[%c0_35, %c20, %c0_36], %47 {strides = array<i32>} : memref<2x36x256xf32, #tpu.memory_space<vmem>>, vector<2x4x256xf32>,
    %c0_37 = arith.constant 0 : index
    %c0_38 = arith.constant 0 : index
    %c143 = arith.constant 143 : index
    %49 = vector.load %arg10[%c0_37, %c0_38, %c143] : memref<2x4x512xf32, #tpu.memory_space<vmem>>, vector<2x4x256xf32>
    %50 = vector.broadcast %20 : vector<1x1x256xf32> to vector<2x4x256xf32>
    %51 = arith.mulf %49, %50 : vector<2x4x256xf32>
    %c0_39 = arith.constant 0 : index
    %c24 = arith.constant 24 : index
    %c0_40 = arith.constant 0 : index
    %52 = vector.load %arg11[%c0_39, %c24, %c0_40] : memref<2x36x256xf32, #tpu.memory_space<vmem>>, vector<2x4x256xf32>
    tpu.vector_store %arg11[%c0_39, %c24, %c0_40], %51 {strides = array<i32>} : memref<2x36x256xf32, #tpu.memory_space<vmem>>, vector<2x4x256xf32>,
    %c0_41 = arith.constant 0 : index
    %c0_42 = arith.constant 0 : index
    %c144 = arith.constant 144 : index
    %53 = vector.load %arg10[%c0_41, %c0_42, %c144] : memref<2x4x512xf32, #tpu.memory_space<vmem>>, vector<2x4x256xf32>
    %c0_43 = arith.constant 0 : index
    %c28 = arith.constant 28 : index
    %c0_44 = arith.constant 0 : index
    %54 = vector.load %arg11[%c0_43, %c28, %c0_44] : memref<2x36x256xf32, #tpu.memory_space<vmem>>, vector<2x4x256xf32>
    tpu.vector_store %arg11[%c0_43, %c28, %c0_44], %53 {strides = array<i32>} : memref<2x36x256xf32, #tpu.memory_space<vmem>>, vector<2x4x256xf32>,
    %c0_45 = arith.constant 0 : index
    %c0_46 = arith.constant 0 : index
    %c145 = arith.constant 145 : index
    %55 = vector.load %arg10[%c0_45, %c0_46, %c145] : memref<2x4x512xf32, #tpu.memory_space<vmem>>, vector<2x4x256xf32>
    %56 = vector.broadcast %24 : vector<1x1x256xf32> to vector<2x4x256xf32>
    %57 = arith.mulf %55, %56 : vector<2x4x256xf32>
    %c0_47 = arith.constant 0 : index
    %c32 = arith.constant 32 : index
    %c0_48 = arith.constant 0 : index
    %58 = vector.load %arg11[%c0_47, %c32, %c0_48] : memref<2x36x256xf32, #tpu.memory_space<vmem>>, vector<2x4x256xf32>
    tpu.vector_store %arg11[%c0_47, %c32, %c0_48], %57 {strides = array<i32>} : memref<2x36x256xf32, #tpu.memory_space<vmem>>, vector<2x4x256xf32>,
    %c0_49 = arith.constant 0 : index
    %c0_50 = arith.constant 0 : index
    %59 = vector.load %arg1[%c0_49, %c0_50] : memref<8x36xf32, #tpu.memory_space<vmem>>, vector<8x36xf32>
    %c0_51 = arith.constant 0 : index
    %c0_52 = arith.constant 0 : index
    %60 = vector.load %arg2[%c0_51, %c0_52] : memref<8x1xf32, #tpu.memory_space<vmem>>, vector<8x1xf32>
    %cst_53 = arith.constant 0.000000e+00 : f32
    %61 = vector.broadcast %cst_53 : f32 to vector<8x1xf32>
    %cst_54 = arith.constant 0.000000e+00 : f32
    %62 = vector.broadcast %cst_54 : f32 to vector<8x1xf32>
    %c0_55 = arith.constant 0 : index
    %c0_56 = arith.constant 0 : index
    %c0_57 = arith.constant 0 : index
    %63 = vector.load %arg11[%c0_55, %c0_56, %c0_57] : memref<2x36x256xf32, #tpu.memory_space<vmem>>, vector<1x36x256xf32>
    %64 = vector.shape_cast %63 : vector<1x36x256xf32> to vector<36x256xf32>
    %cst_58 = arith.constant dense<0.000000e+00> : vector<8x256xf32>
    %65 = tpu.matmul %59, %64, %cst_58 {dimension_numbers = #tpu.dot_dimension_numbers<[1], [0], [0], [1], [0, 0, 1, 1], [], []>} : vector<8x36xf32>, vector<36x256xf32>, vector<8x256xf32> -> vector<8x256xf32>
    %66 = vector.broadcast %60 : vector<8x1xf32> to vector<8x256xf32>
    %67 = arith.addf %65, %66 : vector<8x256xf32>
    %cst_59 = arith.constant dense<0.000000e+00> : vector<8xf32>
    %68 = vector.multi_reduction <add>, %67, %cst_59 [1] : vector<8x256xf32> to vector<8xf32>
    %69 = vector.shape_cast %68 : vector<8xf32> to vector<8x1xf32>
    %70 = arith.addf %61, %69 : vector<8x1xf32>
    %71 = arith.mulf %67, %67 : vector<8x256xf32>
    %cst_60 = arith.constant dense<0.000000e+00> : vector<8xf32>
    %72 = vector.multi_reduction <add>, %71, %cst_60 [1] : vector<8x256xf32> to vector<8xf32>
    %73 = vector.shape_cast %72 : vector<8xf32> to vector<8x1xf32>
    %74 = arith.addf %62, %73 : vector<8x1xf32>
    %c1 = arith.constant 1 : index
    %c0_61 = arith.constant 0 : index
    %c0_62 = arith.constant 0 : index
    %75 = vector.load %arg11[%c1, %c0_61, %c0_62] : memref<2x36x256xf32, #tpu.memory_space<vmem>>, vector<1x36x256xf32>
    %76 = vector.shape_cast %75 : vector<1x36x256xf32> to vector<36x256xf32>
    %cst_63 = arith.constant dense<0.000000e+00> : vector<8x256xf32>
    %77 = tpu.matmul %59, %76, %cst_63 {dimension_numbers = #tpu.dot_dimension_numbers<[1], [0], [0], [1], [0, 0, 1, 1], [], []>} : vector<8x36xf32>, vector<36x256xf32>, vector<8x256xf32> -> vector<8x256xf32>
    %78 = vector.broadcast %60 : vector<8x1xf32> to vector<8x256xf32>
    %79 = arith.addf %77, %78 : vector<8x256xf32>
    %cst_64 = arith.constant dense<0.000000e+00> : vector<8xf32>
    %80 = vector.multi_reduction <add>, %79, %cst_64 [1] : vector<8x256xf32> to vector<8xf32>
    %81 = vector.shape_cast %80 : vector<8xf32> to vector<8x1xf32>
    %82 = arith.addf %70, %81 : vector<8x1xf32>
    %83 = arith.mulf %79, %79 : vector<8x256xf32>
    %cst_65 = arith.constant dense<0.000000e+00> : vector<8xf32>
    %84 = vector.multi_reduction <add>, %83, %cst_65 [1] : vector<8x256xf32> to vector<8xf32>
    %85 = vector.shape_cast %84 : vector<8xf32> to vector<8x1xf32>
    %86 = arith.addf %74, %85 : vector<8x1xf32>
    %cst_66 = arith.constant 5.120000e+02 : f32
    %87 = vector.broadcast %cst_66 : f32 to vector<8x1xf32>
    %88 = arith.divf %82, %87 : vector<8x1xf32>
    %cst_67 = arith.constant 5.120000e+02 : f32
    %89 = vector.broadcast %cst_67 : f32 to vector<8x1xf32>
    %90 = arith.divf %86, %89 : vector<8x1xf32>
    %91 = arith.mulf %88, %88 : vector<8x1xf32>
    %92 = arith.subf %90, %91 : vector<8x1xf32>
    %c0_68 = arith.constant 0 : index
    %c0_69 = arith.constant 0 : index
    %93 = vector.load %arg3[%c0_68, %c0_69] : memref<8x1xf32, #tpu.memory_space<vmem>>, vector<8x1xf32>
    %cst_70 = arith.constant 9.99999974E-6 : f32
    %94 = vector.broadcast %cst_70 : f32 to vector<8x1xf32>
    %95 = arith.addf %92, %94 : vector<8x1xf32>
    %96 = math.rsqrt %95 : vector<8x1xf32>
    %97 = arith.mulf %93, %96 : vector<8x1xf32>
    %c0_71 = arith.constant 0 : index
    %c0_72 = arith.constant 0 : index
    %98 = vector.load %arg4[%c0_71, %c0_72] : memref<8x1xf32, #tpu.memory_space<vmem>>, vector<8x1xf32>
    %99 = arith.mulf %88, %97 : vector<8x1xf32>
    %100 = arith.subf %98, %99 : vector<8x1xf32>
    %101 = vector.broadcast %97 : vector<8x1xf32> to vector<8x256xf32>
    %102 = arith.mulf %67, %101 : vector<8x256xf32>
    %103 = vector.broadcast %100 : vector<8x1xf32> to vector<8x256xf32>
    %104 = arith.addf %102, %103 : vector<8x256xf32>
    %cst_73 = arith.constant 0.000000e+00 : f32
    %105 = vector.broadcast %cst_73 : f32 to vector<8x256xf32>
    %106 = arith.maximumf %104, %105 : vector<8x256xf32>
    %107 = vector.broadcast %97 : vector<8x1xf32> to vector<8x256xf32>
    %108 = arith.mulf %79, %107 : vector<8x256xf32>
    %109 = vector.broadcast %100 : vector<8x1xf32> to vector<8x256xf32>
    %110 = arith.addf %108, %109 : vector<8x256xf32>
    %cst_74 = arith.constant 0.000000e+00 : f32
    %111 = vector.broadcast %cst_74 : f32 to vector<8x256xf32>
    %112 = arith.maximumf %110, %111 : vector<8x256xf32>
    %cst_75 = arith.constant 0.000000e+00 : f32
    %113 = vector.broadcast %cst_75 : f32 to vector<2x8x512xf32>
    %c0_76 = arith.constant 0 : index
    %c0_77 = arith.constant 0 : index
    %c0_78 = arith.constant 0 : index
    %114 = vector.load %arg12[%c0_76, %c0_77, %c0_78] : memref<2x8x512xf32, #tpu.memory_space<vmem>>, vector<2x8x512xf32>
    tpu.vector_store %arg12[%c0_76, %c0_77, %c0_78], %113 {strides = array<i32>} : memref<2x8x512xf32, #tpu.memory_space<vmem>>, vector<2x8x512xf32>,
    %c0_79 = arith.constant 0 : index
    %c0_80 = arith.constant 0 : index
    %c128_81 = arith.constant 128 : index
    %115 = vector.load %arg12[%c0_79, %c0_80, %c128_81] : memref<2x8x512xf32, #tpu.memory_space<vmem>>, vector<1x8x256xf32>
    %116 = vector.shape_cast %115 : vector<1x8x256xf32> to vector<8x256xf32>
    %117 = vector.shape_cast %106 : vector<8x256xf32> to vector<1x8x256xf32>
    tpu.vector_store %arg12[%c0_79, %c0_80, %c128_81], %117 {strides = array<i32>} : memref<2x8x512xf32, #tpu.memory_space<vmem>>, vector<1x8x256xf32>,
    %c1_82 = arith.constant 1 : index
    %c0_83 = arith.constant 0 : index
    %c128_84 = arith.constant 128 : index
    %118 = vector.load %arg12[%c1_82, %c0_83, %c128_84] : memref<2x8x512xf32, #tpu.memory_space<vmem>>, vector<1x8x256xf32>
    %119 = vector.shape_cast %118 : vector<1x8x256xf32> to vector<8x256xf32>
    %120 = vector.shape_cast %112 : vector<8x256xf32> to vector<1x8x256xf32>
    tpu.vector_store %arg12[%c1_82, %c0_83, %c128_84], %120 {strides = array<i32>} : memref<2x8x512xf32, #tpu.memory_space<vmem>>, vector<1x8x256xf32>,
    %c0_85 = arith.constant 0 : index
    %c0_86 = arith.constant 0 : index
    %c111_87 = arith.constant 111 : index
    %121 = vector.load %arg12[%c0_85, %c0_86, %c111_87] : memref<2x8x512xf32, #tpu.memory_space<vmem>>, vector<2x8x256xf32>
    %122 = vector.broadcast %20 : vector<1x1x256xf32> to vector<2x8x256xf32>
    %123 = arith.mulf %121, %122 : vector<2x8x256xf32>
    %c0_88 = arith.constant 0 : index
    %c0_89 = arith.constant 0 : index
    %c0_90 = arith.constant 0 : index
    %124 = vector.load %arg13[%c0_88, %c0_89, %c0_90] : memref<2x72x256xf32, #tpu.memory_space<vmem>>, vector<2x8x256xf32>
    tpu.vector_store %arg13[%c0_88, %c0_89, %c0_90], %123 {strides = array<i32>} : memref<2x72x256xf32, #tpu.memory_space<vmem>>, vector<2x8x256xf32>,
    %c0_91 = arith.constant 0 : index
    %c0_92 = arith.constant 0 : index
    %c112_93 = arith.constant 112 : index
    %125 = vector.load %arg12[%c0_91, %c0_92, %c112_93] : memref<2x8x512xf32, #tpu.memory_space<vmem>>, vector<2x8x256xf32>
    %c0_94 = arith.constant 0 : index
    %c8_95 = arith.constant 8 : index
    %c0_96 = arith.constant 0 : index
    %126 = vector.load %arg13[%c0_94, %c8_95, %c0_96] : memref<2x72x256xf32, #tpu.memory_space<vmem>>, vector<2x8x256xf32>
    tpu.vector_store %arg13[%c0_94, %c8_95, %c0_96], %125 {strides = array<i32>} : memref<2x72x256xf32, #tpu.memory_space<vmem>>, vector<2x8x256xf32>,
    %c0_97 = arith.constant 0 : index
    %c0_98 = arith.constant 0 : index
    %c113_99 = arith.constant 113 : index
    %127 = vector.load %arg12[%c0_97, %c0_98, %c113_99] : memref<2x8x512xf32, #tpu.memory_space<vmem>>, vector<2x8x256xf32>
    %128 = vector.broadcast %24 : vector<1x1x256xf32> to vector<2x8x256xf32>
    %129 = arith.mulf %127, %128 : vector<2x8x256xf32>
    %c0_100 = arith.constant 0 : index
    %c16_101 = arith.constant 16 : index
    %c0_102 = arith.constant 0 : index
    %130 = vector.load %arg13[%c0_100, %c16_101, %c0_102] : memref<2x72x256xf32, #tpu.memory_space<vmem>>, vector<2x8x256xf32>
    tpu.vector_store %arg13[%c0_100, %c16_101, %c0_102], %129 {strides = array<i32>} : memref<2x72x256xf32, #tpu.memory_space<vmem>>, vector<2x8x256xf32>,
    %c0_103 = arith.constant 0 : index
    %c0_104 = arith.constant 0 : index
    %c127_105 = arith.constant 127 : index
    %131 = vector.load %arg12[%c0_103, %c0_104, %c127_105] : memref<2x8x512xf32, #tpu.memory_space<vmem>>, vector<2x8x256xf32>
    %132 = vector.broadcast %20 : vector<1x1x256xf32> to vector<2x8x256xf32>
    %133 = arith.mulf %131, %132 : vector<2x8x256xf32>
    %c0_106 = arith.constant 0 : index
    %c24_107 = arith.constant 24 : index
    %c0_108 = arith.constant 0 : index
    %134 = vector.load %arg13[%c0_106, %c24_107, %c0_108] : memref<2x72x256xf32, #tpu.memory_space<vmem>>, vector<2x8x256xf32>
    tpu.vector_store %arg13[%c0_106, %c24_107, %c0_108], %133 {strides = array<i32>} : memref<2x72x256xf32, #tpu.memory_space<vmem>>, vector<2x8x256xf32>,
    %c0_109 = arith.constant 0 : index
    %c0_110 = arith.constant 0 : index
    %c128_111 = arith.constant 128 : index
    %135 = vector.load %arg12[%c0_109, %c0_110, %c128_111] : memref<2x8x512xf32, #tpu.memory_space<vmem>>, vector<2x8x256xf32>
    %c0_112 = arith.constant 0 : index
    %c32_113 = arith.constant 32 : index
    %c0_114 = arith.constant 0 : index
    %136 = vector.load %arg13[%c0_112, %c32_113, %c0_114] : memref<2x72x256xf32, #tpu.memory_space<vmem>>, vector<2x8x256xf32>
    tpu.vector_store %arg13[%c0_112, %c32_113, %c0_114], %135 {strides = array<i32>} : memref<2x72x256xf32, #tpu.memory_space<vmem>>, vector<2x8x256xf32>,
    %c0_115 = arith.constant 0 : index
    %c0_116 = arith.constant 0 : index
    %c129_117 = arith.constant 129 : index
    %137 = vector.load %arg12[%c0_115, %c0_116, %c129_117] : memref<2x8x512xf32, #tpu.memory_space<vmem>>, vector<2x8x256xf32>
    %138 = vector.broadcast %24 : vector<1x1x256xf32> to vector<2x8x256xf32>
    %139 = arith.mulf %137, %138 : vector<2x8x256xf32>
    %c0_118 = arith.constant 0 : index
    %c40 = arith.constant 40 : index
    %c0_119 = arith.constant 0 : index
    %140 = vector.load %arg13[%c0_118, %c40, %c0_119] : memref<2x72x256xf32, #tpu.memory_space<vmem>>, vector<2x8x256xf32>
    tpu.vector_store %arg13[%c0_118, %c40, %c0_119], %139 {strides = array<i32>} : memref<2x72x256xf32, #tpu.memory_space<vmem>>, vector<2x8x256xf32>,
    %c0_120 = arith.constant 0 : index
    %c0_121 = arith.constant 0 : index
    %c143_122 = arith.constant 143 : index
    %141 = vector.load %arg12[%c0_120, %c0_121, %c143_122] : memref<2x8x512xf32, #tpu.memory_space<vmem>>, vector<2x8x256xf32>
    %142 = vector.broadcast %20 : vector<1x1x256xf32> to vector<2x8x256xf32>
    %143 = arith.mulf %141, %142 : vector<2x8x256xf32>
    %c0_123 = arith.constant 0 : index
    %c48 = arith.constant 48 : index
    %c0_124 = arith.constant 0 : index
    %144 = vector.load %arg13[%c0_123, %c48, %c0_124] : memref<2x72x256xf32, #tpu.memory_space<vmem>>, vector<2x8x256xf32>
    tpu.vector_store %arg13[%c0_123, %c48, %c0_124], %143 {strides = array<i32>} : memref<2x72x256xf32, #tpu.memory_space<vmem>>, vector<2x8x256xf32>,
    %c0_125 = arith.constant 0 : index
    %c0_126 = arith.constant 0 : index
    %c144_127 = arith.constant 144 : index
    %145 = vector.load %arg12[%c0_125, %c0_126, %c144_127] : memref<2x8x512xf32, #tpu.memory_space<vmem>>, vector<2x8x256xf32>
    %c0_128 = arith.constant 0 : index
    %c56 = arith.constant 56 : index
    %c0_129 = arith.constant 0 : index
    %146 = vector.load %arg13[%c0_128, %c56, %c0_129] : memref<2x72x256xf32, #tpu.memory_space<vmem>>, vector<2x8x256xf32>
    tpu.vector_store %arg13[%c0_128, %c56, %c0_129], %145 {strides = array<i32>} : memref<2x72x256xf32, #tpu.memory_space<vmem>>, vector<2x8x256xf32>,
    %c0_130 = arith.constant 0 : index
    %c0_131 = arith.constant 0 : index
    %c145_132 = arith.constant 145 : index
    %147 = vector.load %arg12[%c0_130, %c0_131, %c145_132] : memref<2x8x512xf32, #tpu.memory_space<vmem>>, vector<2x8x256xf32>
    %148 = vector.broadcast %24 : vector<1x1x256xf32> to vector<2x8x256xf32>
    %149 = arith.mulf %147, %148 : vector<2x8x256xf32>
    %c0_133 = arith.constant 0 : index
    %c64 = arith.constant 64 : index
    %c0_134 = arith.constant 0 : index
    %150 = vector.load %arg13[%c0_133, %c64, %c0_134] : memref<2x72x256xf32, #tpu.memory_space<vmem>>, vector<2x8x256xf32>
    tpu.vector_store %arg13[%c0_133, %c64, %c0_134], %149 {strides = array<i32>} : memref<2x72x256xf32, #tpu.memory_space<vmem>>, vector<2x8x256xf32>,
    %c0_135 = arith.constant 0 : index
    %c0_136 = arith.constant 0 : index
    %151 = vector.load %arg5[%c0_135, %c0_136] : memref<8x72xf32, #tpu.memory_space<vmem>>, vector<8x72xf32>
    %c0_137 = arith.constant 0 : index
    %c0_138 = arith.constant 0 : index
    %152 = vector.load %arg6[%c0_137, %c0_138] : memref<8x1xf32, #tpu.memory_space<vmem>>, vector<8x1xf32>
    %cst_139 = arith.constant 0.000000e+00 : f32
    %153 = vector.broadcast %cst_139 : f32 to vector<8x1xf32>
    %cst_140 = arith.constant 0.000000e+00 : f32
    %154 = vector.broadcast %cst_140 : f32 to vector<8x1xf32>
    %c0_141 = arith.constant 0 : index
    %c0_142 = arith.constant 0 : index
    %c0_143 = arith.constant 0 : index
    %155 = vector.load %arg13[%c0_141, %c0_142, %c0_143] : memref<2x72x256xf32, #tpu.memory_space<vmem>>, vector<1x72x256xf32>
    %156 = vector.shape_cast %155 : vector<1x72x256xf32> to vector<72x256xf32>
    %cst_144 = arith.constant dense<0.000000e+00> : vector<8x256xf32>
    %157 = tpu.matmul %151, %156, %cst_144 {dimension_numbers = #tpu.dot_dimension_numbers<[1], [0], [0], [1], [0, 0, 1, 1], [], []>} : vector<8x72xf32>, vector<72x256xf32>, vector<8x256xf32> -> vector<8x256xf32>
    %158 = vector.broadcast %152 : vector<8x1xf32> to vector<8x256xf32>
    %159 = arith.addf %157, %158 : vector<8x256xf32>
    %cst_145 = arith.constant dense<0.000000e+00> : vector<8xf32>
    %160 = vector.multi_reduction <add>, %159, %cst_145 [1] : vector<8x256xf32> to vector<8xf32>
    %161 = vector.shape_cast %160 : vector<8xf32> to vector<8x1xf32>
    %162 = arith.addf %153, %161 : vector<8x1xf32>
    %163 = arith.mulf %159, %159 : vector<8x256xf32>
    %cst_146 = arith.constant dense<0.000000e+00> : vector<8xf32>
    %164 = vector.multi_reduction <add>, %163, %cst_146 [1] : vector<8x256xf32> to vector<8xf32>
    %165 = vector.shape_cast %164 : vector<8xf32> to vector<8x1xf32>
    %166 = arith.addf %154, %165 : vector<8x1xf32>
    %c1_147 = arith.constant 1 : index
    %c0_148 = arith.constant 0 : index
    %c0_149 = arith.constant 0 : index
    %167 = vector.load %arg13[%c1_147, %c0_148, %c0_149] : memref<2x72x256xf32, #tpu.memory_space<vmem>>, vector<1x72x256xf32>
    %168 = vector.shape_cast %167 : vector<1x72x256xf32> to vector<72x256xf32>
    %cst_150 = arith.constant dense<0.000000e+00> : vector<8x256xf32>
    %169 = tpu.matmul %151, %168, %cst_150 {dimension_numbers = #tpu.dot_dimension_numbers<[1], [0], [0], [1], [0, 0, 1, 1], [], []>} : vector<8x72xf32>, vector<72x256xf32>, vector<8x256xf32> -> vector<8x256xf32>
    %170 = vector.broadcast %152 : vector<8x1xf32> to vector<8x256xf32>
    %171 = arith.addf %169, %170 : vector<8x256xf32>
    %cst_151 = arith.constant dense<0.000000e+00> : vector<8xf32>
    %172 = vector.multi_reduction <add>, %171, %cst_151 [1] : vector<8x256xf32> to vector<8xf32>
    %173 = vector.shape_cast %172 : vector<8xf32> to vector<8x1xf32>
    %174 = arith.addf %162, %173 : vector<8x1xf32>
    %175 = arith.mulf %171, %171 : vector<8x256xf32>
    %cst_152 = arith.constant dense<0.000000e+00> : vector<8xf32>
    %176 = vector.multi_reduction <add>, %175, %cst_152 [1] : vector<8x256xf32> to vector<8xf32>
    %177 = vector.shape_cast %176 : vector<8xf32> to vector<8x1xf32>
    %178 = arith.addf %166, %177 : vector<8x1xf32>
    %cst_153 = arith.constant 5.120000e+02 : f32
    %179 = vector.broadcast %cst_153 : f32 to vector<8x1xf32>
    %180 = arith.divf %174, %179 : vector<8x1xf32>
    %cst_154 = arith.constant 5.120000e+02 : f32
    %181 = vector.broadcast %cst_154 : f32 to vector<8x1xf32>
    %182 = arith.divf %178, %181 : vector<8x1xf32>
    %183 = arith.mulf %180, %180 : vector<8x1xf32>
    %184 = arith.subf %182, %183 : vector<8x1xf32>
    %c0_155 = arith.constant 0 : index
    %c0_156 = arith.constant 0 : index
    %185 = vector.load %arg7[%c0_155, %c0_156] : memref<8x1xf32, #tpu.memory_space<vmem>>, vector<8x1xf32>
    %cst_157 = arith.constant 9.99999974E-6 : f32
    %186 = vector.broadcast %cst_157 : f32 to vector<8x1xf32>
    %187 = arith.addf %184, %186 : vector<8x1xf32>
    %188 = math.rsqrt %187 : vector<8x1xf32>
    %189 = arith.mulf %185, %188 : vector<8x1xf32>
    %c0_158 = arith.constant 0 : index
    %c0_159 = arith.constant 0 : index
    %190 = vector.load %arg8[%c0_158, %c0_159] : memref<8x1xf32, #tpu.memory_space<vmem>>, vector<8x1xf32>
    %191 = arith.mulf %180, %189 : vector<8x1xf32>
    %192 = arith.subf %190, %191 : vector<8x1xf32>
    %193 = vector.broadcast %189 : vector<8x1xf32> to vector<8x256xf32>
    %194 = arith.mulf %159, %193 : vector<8x256xf32>
    %195 = vector.broadcast %192 : vector<8x1xf32> to vector<8x256xf32>
    %196 = arith.addf %194, %195 : vector<8x256xf32>
    %cst_160 = arith.constant 0.000000e+00 : f32
    %197 = vector.broadcast %cst_160 : f32 to vector<8x256xf32>
    %198 = arith.maximumf %196, %197 : vector<8x256xf32>
    %199 = vector.broadcast %189 : vector<8x1xf32> to vector<8x256xf32>
    %200 = arith.mulf %171, %199 : vector<8x256xf32>
    %201 = vector.broadcast %192 : vector<8x1xf32> to vector<8x256xf32>
    %202 = arith.addf %200, %201 : vector<8x256xf32>
    %cst_161 = arith.constant 0.000000e+00 : f32
    %203 = vector.broadcast %cst_161 : f32 to vector<8x256xf32>
    %204 = arith.maximumf %202, %203 : vector<8x256xf32>
    %c0_162 = arith.constant 0 : index
    %c0_163 = arith.constant 0 : index
    %c0_164 = arith.constant 0 : index
    %205 = vector.load %arg9[%c0_162, %c0_163, %c0_164] : memref<2x8x256xf32, #tpu.memory_space<vmem>>, vector<1x8x256xf32>
    %206 = vector.shape_cast %205 : vector<1x8x256xf32> to vector<8x256xf32>
    %207 = vector.shape_cast %198 : vector<8x256xf32> to vector<1x8x256xf32>
    tpu.vector_store %arg9[%c0_162, %c0_163, %c0_164], %207 {strides = array<i32>} : memref<2x8x256xf32, #tpu.memory_space<vmem>>, vector<1x8x256xf32>,
    %c1_165 = arith.constant 1 : index
    %c0_166 = arith.constant 0 : index
    %c0_167 = arith.constant 0 : index
    %208 = vector.load %arg9[%c1_165, %c0_166, %c0_167] : memref<2x8x256xf32, #tpu.memory_space<vmem>>, vector<1x8x256xf32>
    %209 = vector.shape_cast %208 : vector<1x8x256xf32> to vector<8x256xf32>
    %210 = vector.shape_cast %204 : vector<8x256xf32> to vector<1x8x256xf32>
    tpu.vector_store %arg9[%c1_165, %c0_166, %c0_167], %210 {strides = array<i32>} : memref<2x8x256xf32, #tpu.memory_space<vmem>>, vector<1x8x256xf32>,
    return
  }
}

</mosaic_0001>

<bundles_post_ra>
// kernel: tpu_custom_call.1
= control target key start
LH: loop header
LB: loop body
LE: loop exit
PB: predicated region body
PF: predicated region fallthrough
CT: control target
= control target key end

     0   :  { %v33_v1 = vlaneseq  ;;  %v1446_v3 = vmov 0.0   ;;  %s1447_s13 = smov 112   ;;  %s2029_s0 = inlined_call_operand.vmem [shape: f32[2,4,256], index: 0, kind: input, shape index: {}]   ;;  %s2030_s1 = inlined_call_operand.vmem [shape: f32[8,36], index: 1, kind: input, shape index: {}]   ;;  %s2031_s2 = inlined_call_operand.vmem [shape: f32[8,1], index: 2, kind: input, shape index: {}]   ;;  %s2032_s3 = inlined_call_operand.vmem [shape: f32[8,1], index: 3, kind: input, shape index: {}]   ;;  %s2033_s4 = inlined_call_operand.vmem [shape: f32[8,1], index: 4, kind: input, shape index: {}]   ;;  %s2034_s5 = inlined_call_operand.vmem [shape: f32[8,72], index: 5, kind: input, shape index: {}]   ;;  %s2035_s6 = inlined_call_operand.vmem [shape: f32[8,1], index: 6, kind: input, shape index: {}]   ;;  %s2036_s7 = inlined_call_operand.vmem [shape: f32[8,1], index: 7, kind: input, shape index: {}]   ;;  %s2037_s8 = inlined_call_operand.vmem [shape: f32[8,1], index: 8, kind: input, shape index: {}]   ;;  %s2038_s9 = inlined_call_operand.hbm [shape: f32[2,8,256], index: 9, kind: output, shape index: {}]  }
   0x1   :  { %v1511_v0 = vld [vmem:[%s2029_s0] sm:$0xff]  ;;  %v1516_v2 = vld [vmem:[%s2029_s0 + $0x8] sm:$0xff]  ;;  %72 = vst [vmem:[#allocation2] sm:$0xff] %v1446_v3  ;;  %73 = vst [vmem:[#allocation2 + $0x8] sm:$0xff] %v1446_v3  ;;  %636 = vmatprep.mubr.f32.mxu1 %v1446_v3 }
   0x2   :  { %379 = vrot.lane.b32.xlu0 %v1511_v0, %s1447_s13  ;;  %74 = vst [vmem:[#allocation2 + $0x10] sm:$0xff] %v1446_v3  ;;  %75 = vst [vmem:[#allocation2 + $0x18] sm:$0xff] %v1446_v3 }
   0x3   :  { %271 = vst [vmem:[#allocation3 + $0x8] sm:$0xf] %v1511_v0  ;;  %273 = vst [vmem:[#allocation3 + $0x18] sm:$0xf] %v1516_v2 }
   0x4   :  { %14 = vsyncpa [#allocation7], 0  ;;  %78 = vst [vmem:[#allocation2 + $0x4] sm:$0xff] %v1511_v0  ;;  %v34_v4 = vand.u32 127, %v33_v1  ;;  %538 = vmatprep.mubr.f32.mxu0 %v1446_v3  ;;  %s1448_s0 = smov 17   ;;  %s1449_s14 = smov 1   ;;  %v373_v16 = vcombine.low %v1511_v0, %v1511_v0  ;;  %v375_v17 = vcombine.low %v1516_v2, %v1516_v2 }
   0x5   :  { %79 = vst [vmem:[#allocation2 + $0x14] sm:$0xff] %v1516_v2  ;;  %s1450_s15 = smov 15   ;;  %s1451_s16 = smov 113   ;;  %vm389_vm4 = vcmask 916480   ;;  %vm116_vm5 = vcmask 138240   ;;  %vm202_vm6 = vcmask 121856  }
   0x6   :  { %v35_v5 = vadd.s32 128, %v34_v4  ;;  %v40_v6 = vand.u32 15, %v34_v4  ;;  %s1452_s17 = smov 127   ;;  %s1453_s18 = smov 111   ;;  %vm250_vm7 = vcmask 7168   ;;  %vm222_vm8 = vcmask 1039360  }
   0x7   :  { %s1454_s19 = smov 16   ;;  %vm153_vm9 = vcmask 130048   ;;  %vm176_vm10 = vcmask 924672   ;;  %vm90_vm11 = vcmask 908288   ;;  %vm467_vm12 = vcmask 1043456   ;;  %s1456_s30 = smov [#allocation6]  }
   0x8   :  { %v47_v7 = vand.u32 15, %v35_v5  ;;  %vm66_vm0 = vcmp.lt.s32.totalorder %v40_v6, 15  ;;  %vm60_vm1 = vcmp.gt.s32.totalorder %v40_v6, 0  ;;  %v1411_v9 = vld [vmem:[#allocation2 + $0xc] ss:$0 sps:$4 sm:$0xff]   ;;  %vm463_vm13 = vcmask 293888  }
   0x9   :  { %v1531_v8 = vsel %vm66_vm0, 1.0, %v1446_v3  ;;  %v1537_v11 = vsel %vm60_vm1, 1.0, %v1446_v3  ;;  %381 = vrot.lane.b32.xlu1 %v1411_v9, %s1447_s13  ;;  %v1413_v15 = vld [vmem:[#allocation2 + $0x1c] ss:$0 sps:$4 sm:$0xff]   ;;  %v403_v26 = vld [vmem:[#allocation2 + $0xc] sm:$0xf] }
   0xa   :  { %vm67_vm2 = vcmp.lt.s32.totalorder %v47_v7, 15  ;;  %vm61_vm3 = vcmp.gt.s32.totalorder %v47_v7, 0  ;;  %v405_v33 = vld [vmem:[#allocation2 + $0x1c] sm:$0xf]  ;;  %v322_v41 = vld [vmem:[#allocation2 + $0xc] sm:$0xf] }
   0xb   :  { %v1534_v10 = vsel %vm67_vm2, 1.0, %v1446_v3  ;;  %v1540_v12 = vsel %vm61_vm3, 1.0, %v1446_v3  ;;  %v1561_v18 = vld [vmem:[#allocation2] sm:$0xff]  ;;  %v1414_v19 = vld [vmem:[#allocation2 + $0x8] ss:$0 sps:$4 sm:$0xff]   ;;  %vm1105_vm14 = vcmask 588800  }
   0xc   :  { %v172_v13 = vcombine.low %v1531_v8, %v1534_v10  ;;  %v86_v14 = vcombine.low %v1537_v11, %v1540_v12  ;;  %v1566_v20 = vld [vmem:[#allocation2 + $0x10] sm:$0xff]  ;;  %v1416_v21 = vld [vmem:[#allocation2 + $0x18] ss:$0 sps:$4 sm:$0xff]   ;;  %v324_v47 = vld [vmem:[#allocation2 + $0x1c] sm:$0xf]  ;;  %s1333_s10 = sshll.u32 %s1456_s30, 4  ;;  %s1334_s10 = int_to_ptr.vmem [resolvable:$true] %s1333_s10 }
   0xd   :  { %v167_v50 = vld [vmem:[#allocation2 + $0x8] sm:$0xf]  ;;  %v169_v62 = vld [vmem:[#allocation2 + $0x18] sm:$0xf]  ;;  %p1429_p1 = scmp.lt.s32.totalorder %s1334_s10, %s1334_s10 }
   0xe   :  { %406 = vrot.lane.b32.xlu0 %v172_v13, %s1448_s0  ;;  %279 = vrot.lane.b32.xlu1 %v172_v13, %s1449_s14  ;;  %v81_v4 = vld [vmem:[#allocation2 + $0x8] sm:$0xf] }
  0x12   :  { %325 = vrot.lane.b32.xlu0 %v86_v14, %s1450_s15  ;;  %173 = vrot.lane.b32.xlu1 %v172_v13, %s1451_s16 }
  0x16   :  { %219 = vrot.lane.b32.xlu0 %v86_v14, %s1452_s17  ;;  %87 = vrot.lane.b32.xlu1 %v86_v14, %s1453_s18 }
  0x1a   :  { %385 = vrot.lane.b32.xlu0 %v1516_v2, %s1447_s13  ;;  %387 = vrot.lane.b32.xlu1 %v1413_v15, %s1447_s13 }
  0x1e   :  { %377 = vrot.lane.b32.xlu0 %v373_v16, %s1447_s13  ;;  %383 = vrot.lane.b32.xlu1 %v375_v17, %s1447_s13 }
  0x22   :  { %143 = vrot.lane.b32.xlu0 %v1561_v18, %s1454_s19  ;;  %145 = vrot.lane.b32.xlu1 %v1414_v19, %s1454_s19 }
  0x26   :  { %149 = vrot.lane.b32.xlu0 %v1566_v20, %s1454_s19  ;;  %151 = vrot.lane.b32.xlu1 %v1416_v21, %s1454_s19  ;;  %v83_v21 = vld [vmem:[#allocation2 + $0x18] sm:$0xf] }
  0x74   :  { %v380_v22 = vpop.permute.xlu0 %379 }
  0x7b   :  { %v382_v23 = vpop.permute.xlu1 %381 }
  0x7c   :  { %v391_v24 = vsel %vm389_vm4, %v380_v22, %v382_v23 }
  0x7d   :  { %399 = vst [vmem:[#allocation3 + $0x50] sm:$0xf0] %v391_v24 }
  0x80   :  { %v407_v25 = vpop.permute.xlu0 %406  ;;  %v280_v28 = vpop.permute.xlu1 %279 }
  0x81   :  { %v408_v27 = vrot.slane %v407_v25, 4  ;;  %v1581_v35 = vrot.slane %v280_v28, 4 }
  0x83   :  { %v1574_v29 = vsel %vm116_vm5, %v408_v27, %v407_v25  ;;  %v413_v30 = vmul.f32 %v408_v27, %v403_v26  ;;  %v415_v38 = vmul.f32 %v408_v27, %v405_v33  ;;  %v282_v42 = vsel %vm250_vm7, %v1581_v35, %v280_v28 }
  0x84   :  { %v326_v31 = vpop.permute.xlu0 %325  ;;  %v1578_v32 = vmul.f32 %v1574_v29, %v1511_v0  ;;  %v174_v36 = vpop.permute.xlu1 %173  ;;  %v1598_v46 = vmul.f32 %v282_v42, %v1511_v0  ;;  %v1607_v55 = vmul.f32 %v282_v42, %v1516_v2  ;;  %v414_v25 = vmul.f32 %v1574_v29, %v1516_v2 }
  0x85   :  { %v327_v34 = vrot.slane %v326_v31, 4  ;;  %426 = vrot.lane.b32.xlu1 %v413_v30, %s1453_s18  ;;  %v175_v49 = vrot.slane %v174_v36, 4  ;;  %v267_v30 = vcombine.high %v1511_v0, %v1511_v0  ;;  %v268_v33 = vcombine.high %v1516_v2, %v1516_v2 }
  0x86   :  { %422 = vrot.lane.b32.xlu0 %v1578_v32, %s1453_s18  ;;  %v420_v26 = vcombine.high %v1578_v32, %v1578_v32  ;;  %v421_v28 = vcombine.high %v414_v25, %v414_v25  ;;  %v276_v32 = vld [vmem:[#allocation2 + $0xc] sm:$0xf] }
  0x87   :  { %v1586_v37 = vsel %vm202_vm6, %v327_v34, %v326_v31  ;;  %v332_v44 = vmul.f32 %v327_v34, %v322_v41  ;;  %v334_v52 = vmul.f32 %v327_v34, %v324_v47  ;;  %v181_v58 = vmul.f32 %v175_v49, %v167_v50  ;;  %272 = vst [vmem:[#allocation3 + $0x48] sm:$0xf] %v267_v30  ;;  %v216_v41 = vld [vmem:[#allocation2 + $0x8] sm:$0xf] }
  0x88   :  { %v220_v39 = vpop.permute.xlu0 %219  ;;  %v1590_v40 = vmul.f32 %v1586_v37, %v1511_v0  ;;  %v88_v43 = vpop.permute.xlu1 %87  ;;  %v183_v6 = vmul.f32 %v175_v49, %v169_v62  ;;  %v177_v14 = vsel %vm176_vm10, %v175_v49, %v174_v36  ;;  %v333_v27 = vmul.f32 %v1586_v37, %v1516_v2  ;;  %v278_v0 = vld [vmem:[#allocation2 + $0x1c] sm:$0xf]  ;;  %274 = vst [vmem:[#allocation3 + $0x20] sm:$0xf] %v268_v33 }
  0x89   :  { %432 = vrot.lane.b32.xlu1 %v415_v38, %s1453_s18  ;;  %v1600_v48 = vrot.slane %v220_v39, 4  ;;  %v89_v1 = vrot.slane %v88_v43, 4  ;;  %v180_v19 = vmul.f32 %v177_v14, %v1561_v18  ;;  %v182_v29 = vmul.f32 %v177_v14, %v1566_v20 }
  0x8a   :  { %341 = vrot.lane.b32.xlu0 %v1590_v40, %s1451_s16  ;;  %v339_v31 = vcombine.high %v1590_v40, %v1590_v40  ;;  %v286_v36 = vmul.f32 %v1581_v35, %v276_v32  ;;  %v340_v37 = vcombine.high %v333_v27, %v333_v27  ;;  %v293_v40 = vcombine.low %v1598_v46, %v1598_v46 }
  0x8b   :  { %v223_v56 = vsel %vm222_vm8, %v1600_v48, %v220_v39  ;;  %v95_v15 = vmul.f32 %v89_v1, %v81_v4  ;;  %v97_v23 = vmul.f32 %v89_v1, %v83_v21  ;;  %v288_v39 = vmul.f32 %v1581_v35, %v278_v0 }
  0x8c   :  { %v386_v45 = vpop.permute.xlu0 %385  ;;  %v388_v51 = vpop.permute.xlu1 %387  ;;  %v1617_v61 = vmul.f32 %v223_v56, %v1561_v18  ;;  %v1627_v9 = vmul.f32 %v223_v56, %v1566_v20  ;;  %v294_v38 = vcombine.low %v286_v36, %v286_v36  ;;  %v227_v42 = vmul.f32 %v1600_v48, %v216_v41  ;;  %v447_v56 = vld [vmem:[%s2031_s2] sm:$0xff] }
  0x8d   :  { %345 = vrot.lane.b32.xlu1 %v332_v44, %s1451_s16  ;;  %v393_v53 = vsel %vm389_vm4, %v386_v45, %v388_v51  ;;  %v296_v2 = vcombine.low %v288_v39, %v288_v39  ;;  %v218_v44 = vld [vmem:[#allocation2 + $0x18] sm:$0xf]  ;;  %v189_v47 = vcombine.high %v182_v29, %v182_v29  ;;  %v295_v50 = vcombine.low %v1607_v55, %v1607_v55 }
  0x8e   :  { %299 = vrot.lane.b32.xlu0 %v1598_v46, %s1452_s17  ;;  %401 = vst [vmem:[#allocation3 + $0x30] sm:$0xf0] %v393_v53  ;;  %v229_v35 = vmul.f32 %v1600_v48, %v218_v44  ;;  %v234_v49 = vcombine.low %v1617_v61, %v1617_v61  ;;  %v236_v48 = vcombine.low %v1627_v9, %v1627_v9 }
  0x8f   :  { %v139_v53 = vcombine.low %v1566_v20, %v1566_v20 }
  0x90   :  { %v378_v54 = vpop.permute.xlu0 %377  ;;  %v384_v59 = vpop.permute.xlu1 %383  ;;  %v237_v46 = vcombine.low %v229_v35, %v229_v35 }
  0x91   :  { %v390_v57 = vsel %vm389_vm4, %v378_v54, %v380_v22  ;;  %351 = vrot.lane.b32.xlu1 %v334_v52, %s1451_s16  ;;  %v392_v60 = vsel %vm389_vm4, %v384_v59, %v386_v45  ;;  %v91_v22 = vsel %vm90_vm11, %v89_v1, %v88_v43  ;;  %v188_v43 = vcombine.high %v180_v19, %v180_v19 }
  0x92   :  { %398 = vst [vmem:[#allocation3 + $0x78] sm:$0xf0] %v390_v57  ;;  %305 = vrot.lane.b32.xlu0 %v1607_v55, %s1452_s17  ;;  %400 = vst [vmem:[#allocation3 + $0x98] sm:$0xf0] %v392_v60  ;;  %v94_v24 = vmul.f32 %v1561_v18, %v91_v22  ;;  %v96_v34 = vmul.f32 %v1566_v20, %v91_v22  ;;  %v235_v45 = vcombine.low %v227_v42, %v227_v42  ;;  %v1455_v55 = vmov 0  }
  0x93   :  { %v137_v54 = vcombine.low %v1561_v18, %v1561_v18  ;;  %1368 = vset.pattern.permute.xlu0 %v1455_v55  ;;  %1399 = vset.pattern.permute.xlu1 %v1455_v55 }
  0x94   :  { %v1619_v63 = vpop.permute.xlu0 %143  ;;  %v146_v5 = vpop.permute.xlu1 %145  ;;  %v102_v51 = vcombine.high %v94_v24, %v94_v24  ;;  %v103_v52 = vcombine.high %v96_v34, %v96_v34 }
  0x95   :  { %194 = vrot.lane.b32.xlu1 %v181_v58, %s1450_s15  ;;  %v155_v7 = vsel %vm153_vm9, %v1619_v63, %v146_v5 }
  0x96   :  { %240 = vrot.lane.b32.xlu0 %v1617_v61, %s1449_s14  ;;  %163 = vst [vmem:[#allocation3 + $0x68] sm:$0xf0] %v155_v7 }
  0x98   :  { %v1629_v13 = vpop.permute.xlu0 %149  ;;  %v152_v16 = vpop.permute.xlu1 %151 }
  0x99   :  { %200 = vrot.lane.b32.xlu1 %v183_v6, %s1450_s15  ;;  %v157_v17 = vsel %vm153_vm9, %v1629_v13, %v152_v16 }
  0x9a   :  { %246 = vrot.lane.b32.xlu0 %v1627_v9, %s1449_s14  ;;  %165 = vst [vmem:[#allocation3 + $0x58] sm:$0xf0] %v157_v17 }
  0x9d   :  { %108 = vrot.lane.b32.xlu1 %v95_v15, %s1448_s0 }
  0x9e   :  { %190 = vrot.lane.b32.xlu0 %v180_v19, %s1450_s15 }
  0xa1   :  { %114 = vrot.lane.b32.xlu1 %v97_v23, %s1448_s0 }
  0xa2   :  { %104 = vrot.lane.b32.xlu0 %v94_v24, %s1448_s0 }
  0xa5   :  { %428 = vrot.lane.b32.xlu1 %v414_v25, %s1453_s18 }
  0xa6   :  { %424 = vrot.lane.b32.xlu0 %v420_v26, %s1453_s18 }
  0xa9   :  { %347 = vrot.lane.b32.xlu1 %v333_v27, %s1451_s16 }
  0xaa   :  { %430 = vrot.lane.b32.xlu0 %v421_v28, %s1453_s18 }
  0xad   :  { %196 = vrot.lane.b32.xlu1 %v182_v29, %s1450_s15 }
  0xae   :  { %343 = vrot.lane.b32.xlu0 %v339_v31, %s1451_s16 }
  0xb1   :  { %110 = vrot.lane.b32.xlu1 %v96_v34, %s1448_s0 }
  0xb2   :  { %349 = vrot.lane.b32.xlu0 %v340_v37, %s1451_s16 }
  0xb5   :  { %301 = vrot.lane.b32.xlu1 %v294_v38, %s1452_s17 }
  0xb6   :  { %297 = vrot.lane.b32.xlu0 %v293_v40, %s1452_s17 }
  0xb9   :  { %307 = vrot.lane.b32.xlu1 %v296_v2, %s1452_s17 }
  0xba   :  { %192 = vrot.lane.b32.xlu0 %v188_v43, %s1450_s15 }
  0xbd   :  { %242 = vrot.lane.b32.xlu1 %v235_v45, %s1449_s14 }
  0xbe   :  { %198 = vrot.lane.b32.xlu0 %v189_v47, %s1450_s15 }
  0xc1   :  { %248 = vrot.lane.b32.xlu1 %v237_v46, %s1449_s14 }
  0xc2   :  { %238 = vrot.lane.b32.xlu0 %v234_v49, %s1449_s14 }
  0xc5   :  { %303 = vrot.lane.b32.xlu1 %v295_v50, %s1452_s17 }
  0xc6   :  { %106 = vrot.lane.b32.xlu0 %v102_v51, %s1448_s0 }
  0xc9   :  { %244 = vrot.lane.b32.xlu1 %v236_v48, %s1449_s14 }
  0xca   :  { %112 = vrot.lane.b32.xlu0 %v103_v52, %s1448_s0 }
  0xcd   :  { %147 = vrot.lane.b32.xlu1 %v139_v53, %s1454_s19 }
  0xce   :  { %141 = vrot.lane.b32.xlu0 %v137_v54, %s1454_s19 }
  0xd2   :  { %460 = vperm.xlu0 %1368, %v447_v56  }
  0xf7   :  { %v427_v20 = vpop.permute.xlu1 %426 }
  0xf8   :  { %v423_v57 = vpop.permute.xlu0 %422 }
  0xfb   :  { %v433_v58 = vpop.permute.xlu1 %432 }
  0xfc   :  { %v342_v59 = vpop.permute.xlu0 %341 }
  0xff   :  { %v346_v60 = vpop.permute.xlu1 %345 }
 0x100   :  { %v300_v18 = vpop.permute.xlu0 %299 }
 0x103   :  { %v352_v61 = vpop.permute.xlu1 %351 }
 0x104   :  { %v1699_v62 = vpop.permute.xlu0 %305 }
 0x107   :  { %v195_v1 = vpop.permute.xlu1 %194 }
 0x108   :  { %v1701_v4 = vpop.permute.xlu0 %240 }
 0x10b   :  { %v1703_v5 = vpop.permute.xlu1 %200 }
 0x10c   :  { %v1705_v6 = vpop.permute.xlu0 %246 }
 0x10f   :  { %v1707_v7 = vpop.permute.xlu1 %108 }
 0x110   :  { %v191_v9 = vpop.permute.xlu0 %190 }
 0x113   :  { %v1709_v14 = vpop.permute.xlu1 %114 }
 0x114   :  { %v1711_v15 = vpop.permute.xlu0 %104 }
 0x117   :  { %v429_v16 = vpop.permute.xlu1 %428 }
 0x118   :  { %v425_v17 = vpop.permute.xlu0 %424 }
 0x119   :  { %v434_v19 = vsel %vm90_vm11, %v423_v57, %v425_v17  ;;  %v435_v21 = vsel %vm90_vm11, %v425_v17, %v427_v20 }
 0x11a   :  { %442 = vst [vmem:[#allocation3 + $0x10] sm:$0xf] %v434_v19  ;;  %443 = vst [vmem:[#allocation3 + $0x28] sm:$0xf] %v435_v21 }
 0x11b   :  { %v348_v22 = vpop.permute.xlu1 %347 }
 0x11c   :  { %v431_v23 = vpop.permute.xlu0 %430 }
 0x11d   :  { %v436_v24 = vsel %vm90_vm11, %v429_v16, %v431_v23  ;;  %v437_v25 = vsel %vm90_vm11, %v431_v23, %v433_v58 }
 0x11e   :  { %444 = vst [vmem:[#allocation3 + $0x80] sm:$0xf] %v436_v24  ;;  %445 = vst [vmem:[#allocation3 + $0x90] sm:$0xf] %v437_v25 }
 0x11f   :  { %v197_v26 = vpop.permute.xlu1 %196 }
 0x120   :  { %v344_v27 = vpop.permute.xlu0 %343 }
 0x121   :  { %v353_v28 = vsel %vm176_vm10, %v342_v59, %v344_v27  ;;  %v354_v30 = vsel %vm176_vm10, %v344_v27, %v346_v60  ;;  %v457_v29 = vld [vmem:[#allocation3 + $0x28] sm:$0xf]  ;;  %v456_v31 = vld [vmem:[#allocation3 + $0x10] sm:$0xf] }
 0x122   :  { %361 = vst [vmem:[#allocation3 + $0x78] sm:$0xf] %v353_v28  ;;  %362 = vst [vmem:[#allocation3 + $0x50] sm:$0xf] %v354_v30  ;;  %1348 = vmatprep.subr.msk.mxu0 %vm467_vm12, %v457_v29 }
 0x123   :  { %v1720_v32 = vpop.permute.xlu1 %110  ;;  %1349 = vmatpush1.msk.msra.mxu0 %vm467_vm12, %v456_v31 }
 0x124   :  { %v350_v33 = vpop.permute.xlu0 %349 }
 0x125   :  { %v355_v34 = vsel %vm176_vm10, %v348_v22, %v350_v33  ;;  %v356_v36 = vsel %vm176_vm10, %v350_v33, %v352_v61  ;;  %v565_v37 = vld [vmem:[#allocation3 + $0x90] sm:$0xf]  ;;  %v564_v0 = vld [vmem:[#allocation3 + $0x80] sm:$0xf] }
 0x126   :  { %363 = vst [vmem:[#allocation3 + $0x98] sm:$0xf] %v355_v34  ;;  %364 = vst [vmem:[#allocation3 + $0x30] sm:$0xf] %v356_v36  ;;  %1351 = vmatprep.subr.msk.mxu1 %vm467_vm12, %v565_v37 }
 0x127   :  { %v302_v38 = vpop.permute.xlu1 %301  ;;  %1352 = vmatpush1.msk.msra.mxu1 %vm467_vm12, %v564_v0 }
 0x128   :  { %v310_v39 = vsel %vm222_vm8, %v300_v18, %v302_v38  ;;  %v298_v40 = vpop.permute.xlu0 %297 }
 0x129   :  { %318 = vst [vmem:[#allocation3 + $0x48] sm:$0xf0] %v310_v39  ;;  %v309_v41 = vsel %vm222_vm8, %v298_v40, %v300_v18  ;;  %v455_v2 = vld [vmem:[#allocation3 + $0x50] sm:$0xff]  ;;  %v454_v42 = vld [vmem:[#allocation3 + $0x78] sm:$0xff] }
 0x12a   :  { %317 = vst [vmem:[#allocation3 + $0x8] sm:$0xf0] %v309_v41  ;;  %498 = vmatprep.subr.mxu0 %v455_v2 }
 0x12b   :  { %v308_v43 = vpop.permute.xlu1 %307  ;;  %499 = vmatpush1.msra.mxu0 %v454_v42 }
 0x12c   :  { %v312_v44 = vsel %vm222_vm8, %v1699_v62, %v308_v43  ;;  %v193_v45 = vpop.permute.xlu0 %192 }
 0x12d   :  { %320 = vst [vmem:[#allocation3 + $0x20] sm:$0xf0] %v312_v44  ;;  %v203_v35 = vsel %vm202_vm6, %v191_v9, %v193_v45  ;;  %v204_v47 = vsel %vm202_vm6, %v193_v45, %v195_v1  ;;  %v563_v46 = vld [vmem:[#allocation3 + $0x30] sm:$0xff]  ;;  %v562_v49 = vld [vmem:[#allocation3 + $0x98] sm:$0xff]  ;;  %v1369_v44 = vpack.i.bf16 %v1534_v10, %v1531_v8  ;;  %v1374_v45 = vpack.i.bf16 %v1540_v12, %v1537_v11 }
 0x12e   :  { %211 = vst [vmem:[#allocation3 + $0x60] sm:$0xf] %v203_v35  ;;  %212 = vst [vmem:[#allocation3 + $0x38] sm:$0xf] %v204_v47  ;;  %596 = vmatprep.subr.mxu1 %v563_v46 }
 0x12f   :  { %v243_v50 = vpop.permute.xlu1 %242  ;;  %597 = vmatpush1.msra.mxu1 %v562_v49 }
 0x130   :  { %v252_v51 = vsel %vm250_vm7, %v1701_v4, %v243_v50  ;;  %v199_v48 = vpop.permute.xlu0 %198  ;;  %v453_v52 = vld [vmem:[#allocation3 + $0x48] sm:$0xff] }
 0x131   :  { %260 = vst [vmem:[#allocation3 + $0x38] sm:$0xf0] %v252_v51  ;;  %v205_v53 = vsel %vm202_vm6, %v197_v26, %v199_v48  ;;  %v206_v54 = vsel %vm202_vm6, %v199_v48, %v1703_v5  ;;  %500 = vmatprep.subr.mxu0 %v453_v52  ;;  %v452_v55 = vld [vmem:[#allocation3 + $0x8] sm:$0xff] }
 0x132   :  { %213 = vst [vmem:[#allocation3 + $0x88] sm:$0xf] %v205_v53  ;;  %214 = vst [vmem:[#allocation3 + $0x40] sm:$0xf] %v206_v54  ;;  %501 = vmatpush1.msra.mxu0 %v452_v55 }
 0x133   :  { %v249_v56 = vpop.permute.xlu1 %248 }
 0x134   :  { %v254_v20 = vsel %vm250_vm7, %v1705_v6, %v249_v56  ;;  %v239_v57 = vpop.permute.xlu0 %238  ;;  %v561_v58 = vld [vmem:[#allocation3 + $0x20] sm:$0xff] }
 0x135   :  { %262 = vst [vmem:[#allocation3 + $0x40] sm:$0xf0] %v254_v20  ;;  %v251_v59 = vsel %vm250_vm7, %v239_v57, %v1701_v4  ;;  %598 = vmatprep.subr.mxu1 %v561_v58 }
 0x136   :  { %259 = vst [vmem:[#allocation3 + $0x60] sm:$0xf0] %v251_v59 }
 0x137   :  { %v304_v60 = vpop.permute.xlu1 %303 }
 0x138   :  { %v311_v18 = vsel %vm222_vm8, %v304_v60, %v1699_v62  ;;  %v107_v61 = vpop.permute.xlu0 %106  ;;  %v451_v1 = vld [vmem:[#allocation3 + $0x38] sm:$0xff] }
 0x139   :  { %319 = vst [vmem:[#allocation3 + $0x18] sm:$0xf0] %v311_v18  ;;  %v117_v5 = vsel %vm116_vm5, %v1711_v15, %v107_v61  ;;  %v118_v9 = vsel %vm116_vm5, %v107_v61, %v1707_v7  ;;  %502 = vmatprep.subr.mxu0 %v451_v1 }
 0x13a   :  { %125 = vst [vmem:[#allocation3] sm:$0xf] %v117_v5  ;;  %126 = vst [vmem:[#allocation3 + $0x68] sm:$0xf] %v118_v9 }
 0x13b   :  { %v245_v16 = vpop.permute.xlu1 %244 }
 0x13c   :  { %v253_v4 = vsel %vm250_vm7, %v245_v16, %v1705_v6  ;;  %v113_v17 = vpop.permute.xlu0 %112  ;;  %v559_v25 = vld [vmem:[#allocation3 + $0x40] sm:$0xff] }
 0x13d   :  { %261 = vst [vmem:[#allocation3 + $0x88] sm:$0xf0] %v253_v4  ;;  %v119_v62 = vsel %vm116_vm5, %v1720_v32, %v113_v17  ;;  %v120_v19 = vsel %vm116_vm5, %v113_v17, %v1709_v14  ;;  %v450_v21 = vld [vmem:[#allocation3 + $0x60] sm:$0xff] }
 0x13e   :  { %127 = vst [vmem:[#allocation3 + $0x70] sm:$0xf] %v119_v62  ;;  %128 = vst [vmem:[#allocation3 + $0x58] sm:$0xf] %v120_v19  ;;  %503 = vmatpush1.msra.mxu0 %v450_v21  ;;  %v658_v62 = vld [vmem:[%s2032_s3] sm:$0xff] }
 0x13f   :  { %v148_v7 = vpop.permute.xlu1 %147 }
 0x140   :  { %v156_v15 = vsel %vm153_vm9, %v148_v7, %v1629_v13  ;;  %v142_v22 = vpop.permute.xlu0 %141  ;;  %v560_v23 = vld [vmem:[#allocation3 + $0x18] sm:$0xff]  ;;  %v446_v13 = vld [vmem:[%s2030_s1] sm:$0xff] }
 0x141   :  { %164 = vst [vmem:[#allocation3 + $0x70] sm:$0xf0] %v156_v15  ;;  %v154_v6 = vsel %vm153_vm9, %v142_v22, %v1619_v63  ;;  %599 = vmatpush1.msra.mxu1 %v560_v23  ;;  %v449_v24 = vld [vmem:[#allocation3 + $0x68] sm:$0xff]  ;;  %v662_v7 = vld [vmem:[%s2033_s4] sm:$0xff] }
 0x142   :  { %162 = vst [vmem:[#allocation3] sm:$0xf0] %v154_v6  ;;  %504 = vmatprep.subr.mxu0 %v449_v24  ;;  %600 = vmatprep.subr.mxu1 %v559_v25 }
 0x144   :  { %v558_v14 = vld [vmem:[#allocation3 + $0x88] sm:$0xff] }
 0x145   :  { %601 = vmatpush1.msra.mxu1 %v558_v14  ;;  %v557_v26 = vld [vmem:[#allocation3 + $0x58] sm:$0xff] }
 0x146   :  { %602 = vmatprep.subr.mxu1 %v557_v26 }
 0x148   :  { %v556_v27 = vld [vmem:[#allocation3 + $0x70] sm:$0xff] }
 0x149   :  { %603 = vmatpush1.msra.mxu1 %v556_v27  ;;  %v448_v28 = vld [vmem:[#allocation3] sm:$0xff] }
 0x14a   :  { %505 = vmatpush1.msra.mxu0 %v448_v28  ;;  %1353 = vmatmul.mubr.msk.f32.vlgmr.msra.gmra.mxu1 %vm463_vm13, %v446_v13 }
 0x14b   :  { %1350 = vmatmul.mubr.msk.f32.vlgmr.msra.gmra.mxu0 %vm463_vm13, %v446_v13  ;;  %1273 = vmatprep.mubr.f32.mxu1 %v1446_v3 }
 0x14c   :  { %1173 = vmatprep.mubr.f32.mxu0 %v1446_v3 }
 0x14d   :  { %v461_v63 = vpop.permute.xlu0 %460 }
 0x20a   :  { %v638_v30 = vpop.f32.mrf.mxu1 }
 0x20b   :  { %v540_v29 = vpop.f32.mrf.mxu0  ;;  %v1763_v31 = vadd.f32 %v638_v30, %v461_v63 }
 0x20c   :  { %v640_v32 = vpop.f32.mrf.mxu1  ;;  %v1767_v36 = vadd.f32 %v540_v29, %v461_v63 }
 0x20d   :  { %v1765_v33 = vadd.f32 %v640_v32, %v461_v63  ;;  %v542_v34 = vpop.f32.mrf.mxu0  ;;  %v647_v38 = vmul.f32 %v1763_v31, %v1763_v31 }
 0x20e   :  { %v1769_v37 = vadd.f32 %v542_v34, %v461_v63  ;;  %v549_v2 = vmul.f32 %v1767_v36, %v1767_v36 }
 0x20f   :  { %v643_v0 = vadd.f32 %v1765_v33, %v1763_v31  ;;  %v648_v39 = vmul.f32 %v1765_v33, %v1765_v33 }
 0x210   :  { %v545_v40 = vadd.f32 %v1769_v37, %v1767_v36  ;;  %v550_v41 = vmul.f32 %v1769_v37, %v1769_v37 }
 0x211   :  { %644 = vadd.xlane.f32.xlu0 %v643_v0  ;;  %v649_v42 = vadd.f32 %v648_v39, %v647_v38 }
 0x212   :  { %546 = vadd.xlane.f32.xlu1 %v545_v40  ;;  %v551_v43 = vadd.f32 %v550_v41, %v549_v2 }
 0x215   :  { %650 = vadd.xlane.f32.xlu0 %v649_v42 }
 0x216   :  { %552 = vadd.xlane.f32.xlu1 %v551_v43 }
 0x227   :  { %1370 = vrot.lane.b32.xlu1 %v1369_v44, %s1448_s0 }
 0x22b   :  { %1375 = vrot.lane.b32.xlu1 %v1374_v45, %s1450_s15  ;;  %1380 = vrot.lane.b32.xlu0 %v1369_v44, %s1449_s14 }
 0x22f   :  { %1385 = vrot.lane.b32.xlu1 %v1374_v45, %s1452_s17  ;;  %1390 = vrot.lane.b32.xlu0 %v1369_v44, %s1451_s16 }
 0x233   :  { %1395 = vrot.lane.b32.xlu1 %v1374_v45, %s1453_s18 }
 0x29a   :  { %v645_v35 = vpop.xlane.xlu0 %644 }
 0x29b   :  { %v547_v47 = vpop.xlane.xlu1 %546 }
 0x29c   :  { %v646_v46 = vadd.f32 %v645_v35, %v547_v47 }
 0x29e   :  { %v654_v49 = vmul.f32 0.001953125, %v646_v46  ;;  %v651_v8 = vpop.xlane.xlu0 %650 }
 0x29f   :  { %v553_v10 = vpop.xlane.xlu1 %552 }
 0x2a0   :  { %v652_v50 = vadd.f32 %v651_v8, %v553_v10  ;;  %v656_v51 = vmul.f32 %v654_v49, %v654_v49 }
 0x2a2   :  { %v655_v48 = vmul.f32 0.001953125, %v652_v50  ;;  %v1381_v12 = vpop.permute.xlu0 %1380 }
 0x2a3   :  { %v1371_v11 = vpop.permute.xlu1 %1370  ;;  %v1795_v55 = vunpack.i.l.bf16 %v1381_v12  ;;  %v1383_v57 = vunpack.i.h.bf16 %v1381_v12 }
 0x2a4   :  { %v657_v52 = vsub.f32 %v655_v48, %v656_v51  ;;  %v1373_v53 = vunpack.i.h.bf16 %v1371_v11  ;;  %v1793_v54 = vunpack.i.l.bf16 %v1371_v11 }
 0x2a5   :  { %v1806_v61 = vsel %vm250_vm7, %v1795_v55, %v1383_v57  ;;  %v910_v6 = vmul.f32 0.0, %v1383_v57 }
 0x2a6   :  { %v659_v56 = vadd.f32 1e-05, %v657_v52  ;;  %v1046_v20 = vmul.f32 0.0, %v1373_v53  ;;  %v1799_v58 = vsel %vm116_vm5, %v1793_v54, %v1373_v53  ;;  %v1824_v23 = vpop.permute.xlu0 %1390 }
 0x2a7   :  { %v1376_v59 = vpop.permute.xlu1 %1375  ;;  %v1392_v25 = vunpack.i.l.bf16 %v1824_v23  ;;  %v1393_v51 = vunpack.i.h.bf16 %v1824_v23 }
 0x2a8   :  { %1420 = vrsqrt.f32 %v659_v56  ;;  %v1378_v60 = vunpack.i.h.bf16 %v1376_v59  ;;  %v1801_v18 = vunpack.i.l.bf16 %v1376_v59  ;;  %1060 = vrot.lane.b32.xlu1 %v1046_v20, %s1453_s18 }
 0x2a9   :  { %v800_v14 = vmul.f32 0.0, %v1392_v25  ;;  %v796_v12 = vsel %vm176_vm10, %v1392_v25, %v1393_v51 }
 0x2aa   :  { %v960_v1 = vmul.f32 0.0, %v1378_v60  ;;  %v954_v5 = vsel %vm202_vm6, %v1801_v18, %v1378_v60 }
 0x2ab   :  { %v1386_v9 = vpop.permute.xlu1 %1385 }
 0x2ac   :  { %974 = vrot.lane.b32.xlu0 %v960_v1, %s1451_s16  ;;  %v1811_v16 = vunpack.i.h.bf16 %v1386_v9  ;;  %v1387_v4 = vunpack.i.l.bf16 %v1386_v9 }
 0x2ae   :  { %v1815_v17 = vsel %vm222_vm8, %v1387_v4, %v1811_v16  ;;  %v850_v24 = vmul.f32 0.0, %v1387_v4 }
 0x2af   :  { %v1840_v26 = vpop.permute.xlu1 %1395 }
 0x2b5   :  { %v1421_v19 = vpop.eup %1420 }
 0x2b6   :  { %v661_v21 = vmul.f32 %v1421_v19, %v658_v62 }
 0x2b8   :  { %667 = vperm.xlu1 %1399, %v661_v21   ;;  %v663_v15 = vmul.f32 %v661_v21, %v654_v49 }
 0x2ba   :  { %v664_v22 = vsub.f32 %v662_v7, %v663_v15 }
 0x2bc   :  { %674 = vperm.xlu0 %1368, %v664_v22   ;;  %1066 = vrot.lane.b32.xlu1 %v1046_v20, %s1453_s18 }
 0x2c0   :  { %980 = vrot.lane.b32.xlu0 %v960_v1, %s1451_s16  ;;  %1401 = vrot.lane.b32.xlu1 %v1446_v3, %s1447_s13  ;;  %v1081_v1 = vld [vmem:[%s2035_s6] sm:$0xff] }
 0x2c4   :  { %924 = vrot.lane.b32.xlu0 %v910_v6, %s1452_s17  ;;  %862 = vrot.lane.b32.xlu1 %v850_v24, %s1449_s14 }
 0x2c8   :  { %930 = vrot.lane.b32.xlu0 %v910_v6, %s1452_s17  ;;  %812 = vrot.lane.b32.xlu1 %v800_v14, %s1450_s15 }
 0x2cc   :  { %868 = vrot.lane.b32.xlu0 %v850_v24, %s1449_s14  ;;  %1406 = vrot.lane.b32.xlu1 %v1446_v3, %s1454_s19 }
 0x2d0   :  { %818 = vrot.lane.b32.xlu0 %v800_v14, %s1450_s15 }
 0x31a   :  { %v1842_v13 = vpop.permute.xlu1 %1060 }
 0x31e   :  { %v1844_v27 = vpop.permute.xlu0 %974 }
 0x333   :  { %v668_v28 = vpop.permute.xlu1 %667 }
 0x334   :  { %v670_v63 = vmul.f32 %v668_v28, %v1767_v36  ;;  %v671_v30 = vmul.f32 %v668_v28, %v1769_v37  ;;  %v682_v32 = vmul.f32 %v668_v28, %v1765_v33  ;;  %v681_v40 = vmul.f32 %v668_v28, %v1763_v31 }
 0x337   :  { %v675_v29 = vpop.permute.xlu0 %674 }
 0x338   :  { %v677_v34 = vadd.f32 %v675_v29, %v670_v63  ;;  %v678_v0 = vadd.f32 %v675_v29, %v671_v30  ;;  %v684_v39 = vadd.f32 %v682_v32, %v675_v29  ;;  %v683_v36 = vadd.f32 %v681_v40, %v675_v29 }
 0x33a   :  { %v1849_v38 = vmax.f32 %v677_v34, 0.0  ;;  %v1851_v3 = vmax.f32 %v678_v0, 0.0  ;;  %v1858_v37 = vmax.f32 %v684_v39, 0.0  ;;  %v1864_v33 = vmax.f32 %v683_v36, 0.0 }
 0x33b   :  { %v981_v9 = vpop.permute.xlu0 %980 }
 0x33c   :  { %1008 = vrot.lane.b32.xlu0 %v1851_v3, %s1447_s13  ;;  %1006 = vrot.lane.b32.xlu1 %v1849_v38, %s1447_s13  ;;  %v1047_v31 = vmul.f32 %v1793_v54, %v1864_v33  ;;  %v959_v41 = vmul.f32 %v954_v5, %v1851_v3  ;;  %v962_v2 = vmul.f32 %v954_v5, %v1858_v37  ;;  %v1067_v5 = vpop.permute.xlu1 %1066 }
 0x33d   :  { %v1045_v42 = vmul.f32 %v1799_v58, %v1851_v3  ;;  %v958_v43 = vmul.f32 %v1801_v18, %v1849_v38  ;;  %v1048_v44 = vmul.f32 %v1799_v58, %v1858_v37  ;;  %v909_v45 = vmul.f32 %v1806_v61, %v1851_v3 }
 0x33e   :  { %v1044_v35 = vmul.f32 %v1793_v54, %v1849_v38  ;;  %v912_v47 = vmul.f32 %v1806_v61, %v1858_v37  ;;  %v961_v46 = vmul.f32 %v1801_v18, %v1864_v33  ;;  %v908_v49 = vmul.f32 %v1795_v55, %v1849_v38 }
 0x33f   :  { %v911_v8 = vmul.f32 %v1795_v55, %v1864_v33  ;;  %v851_v10 = vmul.f32 %v1815_v17, %v1849_v38  ;;  %v852_v50 = vmul.f32 %v1811_v16, %v1851_v3  ;;  %v854_v48 = vmul.f32 %v1815_v17, %v1864_v33 }
 0x340   :  { %1014 = vrot.lane.b32.xlu0 %v1858_v37, %s1447_s13  ;;  %764 = vrot.lane.b32.xlu1 %v1849_v38, %s1454_s19  ;;  %v855_v11 = vmul.f32 %v1811_v16, %v1858_v37  ;;  %v801_v52 = vmul.f32 %v796_v12, %v1849_v38  ;;  %v802_v53 = vmul.f32 %v1393_v51, %v1851_v3  ;;  %v1398_v54 = vunpack.i.h.bf16 %v1840_v26  ;;  %v925_v16 = vpop.permute.xlu0 %924  ;;  %v1402_v4 = vpop.permute.xlu1 %1401 }
 0x341   :  { %v1397_v55 = vunpack.i.l.bf16 %v1840_v26  ;;  %v804_v56 = vmul.f32 %v796_v12, %v1864_v33  ;;  %v805_v20 = vmul.f32 %v1393_v51, %v1858_v37  ;;  %v1404_v40 = vunpack.i.h.bf16 %v1402_v4 }
 0x342   :  { %v716_v58 = vmul.f32 %v1398_v54, %v1851_v3  ;;  %v719_v60 = vmul.f32 %v1398_v54, %v1858_v37 }
 0x343   :  { %v710_v57 = vsel %vm90_vm11, %v1397_v55, %v1398_v54  ;;  %v714_v61 = vmul.f32 0.0, %v1397_v55 }
 0x344   :  { %1012 = vrot.lane.b32.xlu0 %v1864_v33, %s1447_s13  ;;  %770 = vrot.lane.b32.xlu1 %v1864_v33, %s1454_s19  ;;  %v715_v59 = vmul.f32 %v710_v57, %v1849_v38  ;;  %v718_v18 = vmul.f32 %v710_v57, %v1864_v33  ;;  %v931_v17 = vpop.permute.xlu0 %930  ;;  %v1948_v62 = vpop.permute.xlu1 %862 }
 0x348   :  { %766 = vrot.lane.b32.xlu0 %v1851_v3, %s1454_s19  ;;  %1062 = vrot.lane.b32.xlu1 %v1047_v31, %s1453_s18  ;;  %v1950_v19 = vpop.permute.xlu1 %812  ;;  %v1952_v21 = vpop.permute.xlu0 %868 }
 0x34c   :  { %772 = vrot.lane.b32.xlu0 %v1858_v37, %s1454_s19  ;;  %972 = vrot.lane.b32.xlu1 %v959_v41, %s1451_s16  ;;  %v1954_v7 = vpop.permute.xlu1 %1406  ;;  %v1956_v15 = vpop.permute.xlu0 %818 }
 0x350   :  { %978 = vrot.lane.b32.xlu1 %v962_v2, %s1451_s16  ;;  %1058 = vrot.lane.b32.xlu0 %v1045_v42, %s1453_s18  ;;  %v1403_v2 = vunpack.i.l.bf16 %v1402_v4  ;;  %v1409_v4 = vunpack.i.h.bf16 %v1954_v7 }
 0x354   :  { %970 = vrot.lane.b32.xlu1 %v958_v43, %s1451_s16  ;;  %1064 = vrot.lane.b32.xlu0 %v1048_v44, %s1453_s18 }
 0x358   :  { %922 = vrot.lane.b32.xlu1 %v909_v45, %s1452_s17  ;;  %1056 = vrot.lane.b32.xlu0 %v1044_v35, %s1453_s18 }
 0x35c   :  { %928 = vrot.lane.b32.xlu1 %v912_v47, %s1452_s17  ;;  %976 = vrot.lane.b32.xlu0 %v961_v46, %s1451_s16 }
 0x360   :  { %920 = vrot.lane.b32.xlu1 %v908_v49, %s1452_s17  ;;  %926 = vrot.lane.b32.xlu0 %v911_v8, %s1452_s17 }
 0x364   :  { %864 = vrot.lane.b32.xlu1 %v851_v10, %s1449_s14  ;;  %866 = vrot.lane.b32.xlu0 %v852_v50, %s1449_s14 }
 0x368   :  { %870 = vrot.lane.b32.xlu1 %v854_v48, %s1449_s14  ;;  %872 = vrot.lane.b32.xlu0 %v855_v11, %s1449_s14 }
 0x36c   :  { %814 = vrot.lane.b32.xlu1 %v801_v52, %s1450_s15  ;;  %816 = vrot.lane.b32.xlu0 %v802_v53, %s1450_s15 }
 0x370   :  { %820 = vrot.lane.b32.xlu1 %v804_v56, %s1450_s15  ;;  %822 = vrot.lane.b32.xlu0 %v805_v20, %s1450_s15 }
 0x374   :  { %730 = vrot.lane.b32.xlu1 %v716_v58, %s1448_s0  ;;  %728 = vrot.lane.b32.xlu0 %v715_v59, %s1448_s0 }
 0x378   :  { %736 = vrot.lane.b32.xlu1 %v719_v60, %s1448_s0  ;;  %734 = vrot.lane.b32.xlu0 %v718_v18, %s1448_s0  ;;  %v1408_v60 = vunpack.i.l.bf16 %v1954_v7 }
 0x37c   :  { %732 = vrot.lane.b32.xlu1 %v714_v61, %s1448_s0  ;;  %726 = vrot.lane.b32.xlu0 %v714_v61, %s1448_s0 }
 0x380   :  { %1102 = vperm.xlu0 %1368, %v1081_v1  }
 0x3ae   :  { %v1009_v22 = vpop.permute.xlu0 %1008  ;;  %v1007_v23 = vpop.permute.xlu1 %1006 }
 0x3af   :  { %v1019_v35 = vsel %vm389_vm4, %v1009_v22, %v1403_v2  ;;  %v1018_v47 = vsel %vm389_vm4, %v1007_v23, %v1009_v22 }
 0x3b2   :  { %v1015_v6 = vpop.permute.xlu0 %1014  ;;  %v1958_v24 = vpop.permute.xlu1 %764 }
 0x3b3   :  { %v1021_v41 = vsel %vm389_vm4, %v1015_v6, %v1404_v40  ;;  %v774_v61 = vsel %vm153_vm9, %v1408_v60, %v1958_v24 }
 0x3b6   :  { %v1013_v25 = vpop.permute.xlu0 %1012  ;;  %v1960_v14 = vpop.permute.xlu1 %770 }
 0x3b7   :  { %v1020_v42 = vsel %vm389_vm4, %v1013_v25, %v1015_v6  ;;  %v1080_v25 = vld [vmem:[%s2034_s5] sm:$0xff] }
 0x3ba   :  { %v1962_v26 = vpop.permute.xlu0 %766  ;;  %v1063_v28 = vpop.permute.xlu1 %1062 }
 0x3bb   :  { %v775_v18 = vsel %vm153_vm9, %v1958_v24, %v1962_v26 }
 0x3be   :  { %v1964_v63 = vpop.permute.xlu0 %772  ;;  %v973_v30 = vpop.permute.xlu1 %972 }
 0x3bf   :  { %v983_v8 = vsel %vm176_vm10, %v973_v30, %v1844_v27 }
 0x3c2   :  { %v979_v29 = vpop.permute.xlu1 %978  ;;  %v1059_v32 = vpop.permute.xlu0 %1058 }
 0x3c3   :  { %v1069_v34 = vsel %vm90_vm11, %v1059_v32, %v1842_v13  ;;  %v985_v45 = vsel %vm176_vm10, %v979_v29, %v981_v9 }
 0x3c4   :  { %1123 = vmatprep.subr.mxu0 %v1069_v34 }
 0x3c6   :  { %v971_v0 = vpop.permute.xlu1 %970  ;;  %v1065_v39 = vpop.permute.xlu0 %1064 }
 0x3c7   :  { %v1070_v36 = vsel %vm90_vm11, %v1063_v28, %v1065_v39  ;;  %v1071_v31 = vsel %vm90_vm11, %v1065_v39, %v1067_v5  ;;  %v982_v10 = vsel %vm176_vm10, %v971_v0, %v973_v30 }
 0x3c8   :  { %1223 = vmatprep.subr.mxu1 %v1071_v31 }
 0x3c9   :  { %1224 = vmatpush1.msra.mxu1 %v1070_v36 }
 0x3ca   :  { %v923_v43 = vpop.permute.xlu1 %922  ;;  %1225 = vmatprep.subr.mxu1 %v1021_v41  ;;  %v1057_v44 = vpop.permute.xlu0 %1056 }
 0x3cb   :  { %v1068_v13 = vsel %vm90_vm11, %v1057_v44, %v1059_v32  ;;  %1226 = vmatpush1.msra.mxu1 %v1020_v42  ;;  %v933_v48 = vsel %vm222_vm8, %v923_v43, %v925_v16 }
 0x3cc   :  { %1124 = vmatpush1.msra.mxu0 %v1068_v13  ;;  %1227 = vmatprep.subr.mxu1 %v985_v45 }
 0x3cd   :  { %1125 = vmatprep.subr.mxu0 %v1019_v35 }
 0x3ce   :  { %v929_v46 = vpop.permute.xlu1 %928  ;;  %1126 = vmatpush1.msra.mxu0 %v1018_v47  ;;  %v977_v49 = vpop.permute.xlu0 %976 }
 0x3cf   :  { %v984_v50 = vsel %vm176_vm10, %v977_v49, %v979_v29  ;;  %1127 = vmatprep.subr.mxu0 %v983_v8  ;;  %v935_v51 = vsel %vm222_vm8, %v929_v46, %v931_v17  ;;  %v777_v17 = vsel %vm153_vm9, %v1960_v14, %v1964_v63 }
 0x3d0   :  { %1128 = vmatpush1.msra.mxu0 %v982_v10  ;;  %1228 = vmatpush1.msra.mxu1 %v984_v50 }
 0x3d1   :  { %1129 = vmatprep.subr.mxu0 %v933_v48  ;;  %1229 = vmatprep.subr.mxu1 %v935_v51 }
 0x3d2   :  { %v921_v11 = vpop.permute.xlu1 %920  ;;  %v927_v12 = vpop.permute.xlu0 %926 }
 0x3d3   :  { %v932_v52 = vsel %vm222_vm8, %v921_v11, %v923_v43  ;;  %v934_v53 = vsel %vm222_vm8, %v927_v12, %v929_v46  ;;  %v1294_v12 = vld [vmem:[%s2036_s7] sm:$0xff]  ;;  %s1424_s7 = scalar_lea.vmem %s1334_s10, 512 }
 0x3d4   :  { %1130 = vmatpush1.msra.mxu0 %v932_v52  ;;  %1230 = vmatpush1.msra.mxu1 %v934_v53  ;;  %p1425_p0 = scmp.ne.s32.totalorder %s1334_s10, %s1424_s7  ;;  %p1430_p2 = scmp.lt.s32.totalorder %s1424_s7, %s1424_s7 }
 0x3d5   :  { %1131 = vmatprep.subr.mxu0 %v1851_v3  ;;  %1231 = vmatprep.subr.mxu1 %v1858_v37 }
 0x3d6   :  { %v865_v27 = vpop.permute.xlu1 %864  ;;  %1132 = vmatpush1.msra.mxu0 %v1849_v38  ;;  %1232 = vmatpush1.msra.mxu1 %v1864_v33  ;;  %v867_v54 = vpop.permute.xlu0 %866  ;;  %p1431_p3 = por %p1430_p2, %p1429_p1 }
 0x3d7   :  { %v874_v55 = vsel %vm250_vm7, %v1948_v62, %v865_v27  ;;  %v875_v56 = vsel %vm250_vm7, %v865_v27, %v867_v54  ;;  %v776_v62 = vsel %vm153_vm9, %v1409_v4, %v1960_v14  ;;  %v1298_v27 = vld [vmem:[%s2037_s8] sm:$0xff] }
 0x3d8   :  { %1133 = vmatprep.subr.mxu0 %v875_v56  ;;  %p1432_p4 = pnand %p1431_p3, %p1425_p0 }
 0x3d9   :  { %1134 = vmatpush1.msra.mxu0 %v874_v55 }
 0x3da   :  { %v871_v20 = vpop.permute.xlu1 %870  ;;  %v873_v57 = vpop.permute.xlu0 %872 }
 0x3db   :  { %v876_v3 = vsel %vm250_vm7, %v1952_v21, %v871_v20  ;;  %v877_v37 = vsel %vm250_vm7, %v871_v20, %v873_v57 }
 0x3dc   :  { %1233 = vmatprep.subr.mxu1 %v877_v37 }
 0x3dd   :  { %1234 = vmatpush1.msra.mxu1 %v876_v3 }
 0x3de   :  { %v815_v38 = vpop.permute.xlu1 %814  ;;  %v817_v58 = vpop.permute.xlu0 %816 }
 0x3df   :  { %v824_v33 = vsel %vm202_vm6, %v1950_v19, %v815_v38  ;;  %v825_v59 = vsel %vm202_vm6, %v815_v38, %v817_v58 }
 0x3e0   :  { %1135 = vmatprep.subr.mxu0 %v825_v59 }
 0x3e1   :  { %1136 = vmatpush1.msra.mxu0 %v824_v33 }
 0x3e2   :  { %v821_v1 = vpop.permute.xlu1 %820  ;;  %1137 = vmatprep.subr.mxu0 %v775_v18  ;;  %v823_v5 = vpop.permute.xlu0 %822 }
 0x3e3   :  { %v826_v9 = vsel %vm202_vm6, %v1956_v15, %v821_v1  ;;  %1138 = vmatpush1.msra.mxu0 %v774_v61  ;;  %v827_v16 = vsel %vm202_vm6, %v821_v1, %v823_v5 }
 0x3e4   :  { %1235 = vmatprep.subr.mxu1 %v827_v16 }
 0x3e5   :  { %1236 = vmatpush1.msra.mxu1 %v826_v9 }
 0x3e6   :  { %v731_v19 = vpop.permute.xlu1 %730  ;;  %1237 = vmatprep.subr.mxu1 %v777_v17  ;;  %v729_v21 = vpop.permute.xlu0 %728 }
 0x3e7   :  { %1238 = vmatpush1.msra.mxu1 %v776_v62  ;;  %v739_v15 = vsel %vm116_vm5, %v729_v21, %v731_v19 }
 0x3e8   :  { %1139 = vmatprep.subr.mxu0 %v739_v15 }
 0x3ea   :  { %v737_v22 = vpop.permute.xlu1 %736  ;;  %v735_v23 = vpop.permute.xlu0 %734 }
 0x3eb   :  { %v741_v7 = vsel %vm116_vm5, %v735_v23, %v737_v22 }
 0x3ec   :  { %1239 = vmatprep.subr.mxu1 %v741_v7 }
 0x3ee   :  { %v733_v6 = vpop.permute.xlu1 %732  ;;  %v727_v24 = vpop.permute.xlu0 %726 }
 0x3ef   :  { %v740_v14 = vsel %vm116_vm5, %v733_v6, %v735_v23  ;;  %v738_v26 = vsel %vm116_vm5, %v727_v24, %v729_v21 }
 0x3f0   :  { %1140 = vmatpush1.msra.mxu0 %v738_v26  ;;  %1240 = vmatpush1.msra.mxu1 %v740_v14 }
 0x3f1   :  { %1354 = vmatmul.mubr.msk.f32.vlgmr.msra.gmra.mxu0 %vm1105_vm14, %v1080_v25  ;;  %1355 = vmatmul.mubr.msk.f32.vlgmr.msra.gmra.mxu1 %vm1105_vm14, %v1080_v25 }
 0x3fb   :  { %v1103_v30 = vpop.permute.xlu0 %1102 }
 0x4b1   :  { %v1175_v28 = vpop.f32.mrf.mxu0  ;;  %v1275_v63 = vpop.f32.mrf.mxu1 }
 0x4b2   :  { %v1176_v34 = vadd.f32 %v1175_v28, %v1103_v30  ;;  %v1276_v0 = vadd.f32 %v1275_v63, %v1103_v30 }
 0x4b3   :  { %v1177_v29 = vpop.f32.mrf.mxu0  ;;  %v1277_v32 = vpop.f32.mrf.mxu1 }
 0x4b4   :  { %v1178_v39 = vadd.f32 %v1177_v29, %v1103_v30  ;;  %v1278_v40 = vadd.f32 %v1277_v32, %v1103_v30  ;;  %v1184_v42 = vmul.f32 %v1176_v34, %v1176_v34  ;;  %v1284_v43 = vmul.f32 %v1276_v0, %v1276_v0 }
 0x4b6   :  { %v1185_v36 = vmul.f32 %v1178_v39, %v1178_v39  ;;  %v1285_v31 = vmul.f32 %v1278_v40, %v1278_v40  ;;  %v1280_v41 = vadd.f32 %v1278_v40, %v1276_v0  ;;  %v1180_v2 = vadd.f32 %v1178_v39, %v1176_v34 }
 0x4b8   :  { %1281 = vadd.xlane.f32.xlu0 %v1280_v41  ;;  %1181 = vadd.xlane.f32.xlu1 %v1180_v2  ;;  %v1186_v44 = vadd.f32 %v1185_v36, %v1184_v42  ;;  %v1286_v13 = vadd.f32 %v1285_v31, %v1284_v43 }
 0x4bc   :  { %1187 = vadd.xlane.f32.xlu0 %v1186_v44  ;;  %1287 = vadd.xlane.f32.xlu1 %v1286_v13 }
 0x541   :  { %v1282_v45 = vpop.xlane.xlu0 %1281  ;;  %v1182_v35 = vpop.xlane.xlu1 %1181 }
 0x542   :  { %v1283_v47 = vadd.f32 %v1282_v45, %v1182_v35 }
 0x544   :  { %v1290_v46 = vmul.f32 0.001953125, %v1283_v47 }
 0x545   :  { %v1188_v49 = vpop.xlane.xlu0 %1187  ;;  %v1288_v8 = vpop.xlane.xlu1 %1287 }
 0x546   :  { %v1289_v10 = vadd.f32 %v1288_v8, %v1188_v49  ;;  %v1292_v50 = vmul.f32 %v1290_v46, %v1290_v46 }
 0x548   :  { %v1291_v51 = vmul.f32 0.001953125, %v1289_v10 }
 0x54a   :  { %v1293_v48 = vsub.f32 %v1291_v51, %v1292_v50 }
 0x54c   :  { %v1295_v11 = vadd.f32 1e-05, %v1293_v48 }
 0x54e   :  { %1422 = vrsqrt.f32 %v1295_v11 }
 0x55b   :  { %v1423_v52 = vpop.eup %1422 }
 0x55c   :  { %v1297_v53 = vmul.f32 %v1423_v52, %v1294_v12 }
 0x55e   :  { %1303 = vperm.xlu0 %1368, %v1297_v53   ;;  %v1299_v54 = vmul.f32 %v1297_v53, %v1290_v46 }
 0x560   :  { %v1300_v55 = vsub.f32 %v1298_v27, %v1299_v54 }
 0x562   :  { %1310 = vperm.xlu1 %1399, %v1300_v55  }
 0x5d9   :  { %v1304_v56 = vpop.permute.xlu0 %1303 }
 0x5da   :  { %v1306_v20 = vmul.f32 %v1304_v56, %v1176_v34  ;;  %v1307_v57 = vmul.f32 %v1304_v56, %v1178_v39  ;;  %v1317_v3 = vmul.f32 %v1304_v56, %v1276_v0  ;;  %v1318_v37 = vmul.f32 %v1304_v56, %v1278_v40 }
 0x5dd   :  { %v1311_v38 = vpop.permute.xlu1 %1310 }
 0x5de   :  { %v1313_v58 = vadd.f32 %v1311_v38, %v1306_v20  ;;  %v1314_v33 = vadd.f32 %v1311_v38, %v1307_v57  ;;  %v1319_v59 = vadd.f32 %v1317_v3, %v1311_v38  ;;  %v1320_v60 = vadd.f32 %v1318_v37, %v1311_v38 }
 0x5e0   :  { %v1315_v18 = vmax.f32 %v1313_v58, 0.0  ;;  %v1316_v61 = vmax.f32 %v1314_v33, 0.0  ;;  %v1321_v1 = vmax.f32 %v1319_v59, 0.0  ;;  %v1322_v5 = vmax.f32 %v1320_v60, 0.0 }
 0x5e2   :  { %1323 = vst [vmem:[#allocation6] sm:$0xff] %v1315_v18  ;;  %1324 = vst [vmem:[#allocation6 + $0x8] sm:$0xff] %v1316_v61 }
 0x5e3   :  { %1326 = vst [vmem:[#allocation6 + $0x10] sm:$0xff] %v1321_v1  ;;  %1327 = vst [vmem:[#allocation6 + $0x18] sm:$0xff] %v1322_v5 }
 0x5e4   :  { %1435 = shalt.err (!%p1432_p4)
}
 0x5e5   :  { %s1457_s8 = smov 256  }
 0x5e6   :  { %1339 = dma.vmem_to_hbm [thread:$0]  %s1334_s10, 512, %s2038_s9, [#allocation7], %s1457_s8, %s1457_s8, %s1454_s19  }
 0x5e7   :  { %1444 = dma.done.wait [#allocation7], 512  }
 0x5e8   :  { %1445 = vsyncadd [#allocation7], 4294966784 }
 0x5e9   :  { %1343 = vsyncpa [#allocation7], 1 }

</bundles_post_ra>
